<compile_context>
chip_gen: v7x
topology: tpu7x:2x2x1
jax: 0.10.0
libtpu: 0.0.40
codegen_flags: <defaults>
</compile_context>

<pallas_src>
import functools

import jax
import jax.numpy as jnp
from jax.experimental import pallas as pl
from jax.experimental.pallas import tpu as pltpu


def _round_up(x, m):
    return ((x + m - 1) // m) * m


def _pick_tile_h(H, W):
    """Smallest divisor of H whose row tile gives an MXU M-dim in [512, 2048]."""
    divs = [d for d in range(1, H + 1) if H % d == 0]
    for d in divs:
        if 512 <= d * W <= 2048:
            return d
    for d in divs:
        if d * W >= 512:
            return d
    return H  # small images: one tile


def _convblock_kernel(x_ref, w_ref, s_ref, b_ref, o_ref, *, ksize, cin, tile_h):
    """One (batch element, row tile) per grid step.

    x_ref : (1, 1, TILE_H + K - 1, W + K - 1, Cin)  bf16, halo row tile
    w_ref : (Kc_pad, Cout_p)                        bf16, im2col-folded weights
    s_ref : (1, Cout_p)                             f32, folded BN scale
    b_ref : (1, Cout_p)                             f32, folded BN bias
    o_ref : (1, TILE_H, W, Cout_p)                  bf16, output row tile
    """
    K = ksize
    TH = tile_h
    W = o_ref.shape[2]
    Cout_p = o_ref.shape[3]
    Kc_pad = w_ref.shape[0]
    kkc = K * K * cin

    xt = x_ref[0, 0]                              # (TH+K-1, W+K-1, Cin) bf16

    # im2col: fold the K*K taps into one contraction dim; only the *packed*
    # K*K*Cin axis is zero-padded to Kc_pad (multiple of 128) — no per-tap
    # Cin padding.  kh slices are major-axis (free); kw slices are sublane
    # offsets (cheap relayout, dwarfed by the single MXU dot below).
    patches = []
    for kh in range(K):
        for kw in range(K):
            patches.append(xt[kh:kh + TH, kw:kw + W, :])
    if Kc_pad > kkc:
        patches.append(jnp.zeros((TH, W, Kc_pad - kkc), dtype=xt.dtype))
    slab = jnp.concatenate(patches, axis=-1).reshape(TH * W, Kc_pad)

    # Single fused MXU matmul per tile, f32 accumulation.
    acc = jnp.dot(slab, w_ref[...], preferred_element_type=jnp.float32)

    # Folded BatchNorm (inference) + ReLU in f32, store bf16 (lane-dense 128).
    y = jnp.maximum(acc * s_ref[...] + b_ref[...], 0.0)
    o_ref[0] = y.reshape(TH, W, Cout_p).astype(o_ref.dtype)


def conv_block_pallas(x_nchw, weight, gamma, beta, mean, var, *, eps=1e-5):
    """ConvBlock forward: Conv2d(K, stride=1, pad=(K-1)//2, bias=False)
    -> BatchNorm2d (inference stats folded) -> ReLU.

    x_nchw : (N, Cin, H, W) float32 (NCHW, like PyTorch). Returns (N, Cout, H, W) f32.
    """
    N, Cin, H, W = x_nchw.shape
    Cout, Cin_w, KH, KW = weight.shape
    assert Cin_w == Cin and KH == KW, "square kernel, groups=1 expected"
    K = KH
    assert K % 2 == 1, "even kernel sizes need asymmetric padding (not implemented)"
    pad = (K - 1) // 2

    LANE = 128
    Cout_p = _round_up(Cout, LANE)
    Kc_pad = _round_up(K * K * Cin, LANE)         # only the packed im2col dim is padded
    tile_h = _pick_tile_h(H, W)
    n_tiles = H // tile_h
    Wp = W + 2 * pad
    THp = tile_h + 2 * pad

    # NCHW -> NHWC (channels on lanes, UNPADDED), spatial zero-pad, bf16, and
    # stack per-tile halo row windows so each grid step DMAs only its tile.
    x = jnp.transpose(x_nchw, (0, 2, 3, 1))
    x = jnp.pad(x, ((0, 0), (pad, pad), (pad, pad), (0, 0))).astype(jnp.bfloat16)
    x_t = jnp.stack([x[:, t * tile_h:t * tile_h + THp] for t in range(n_tiles)],
                    axis=1)                       # (N, n_tiles, THp, Wp, Cin)

    # (Cout, Cin, K, K) -> (K, K, Cin, Cout) -> (K*K*Cin, Cout), pad to (Kc_pad, Cout_p).
    w = jnp.transpose(weight, (2, 3, 1, 0)).reshape(K * K * Cin, Cout)
    w = jnp.pad(w, ((0, Kc_pad - K * K * Cin), (0, Cout_p - Cout))).astype(jnp.bfloat16)

    # Fold BN (inference) into per-channel scale/bias; padded channels -> 0.
    scale = gamma / jnp.sqrt(var + eps)
    bias = beta - mean * scale
    scale = jnp.pad(scale, (0, Cout_p - Cout)).reshape(1, Cout_p).astype(jnp.float32)
    bias = jnp.pad(bias, (0, Cout_p - Cout)).reshape(1, Cout_p).astype(jnp.float32)

    kernel = functools.partial(_convblock_kernel, ksize=K, cin=Cin, tile_h=tile_h)

    # Real VMEM footprint (incl. internal lane/sublane layout padding) + headroom.
    x_blk = THp * _round_up(Wp, 8) * LANE * 2
    o_blk = tile_h * _round_up(W, 8) * Cout_p * 2
    w_bytes = Kc_pad * Cout_p * 2
    slab_bytes = tile_h * W * Kc_pad * 2
    acc_bytes = 2 * tile_h * W * Cout_p * 4
    est_vmem = 2 * x_blk + 2 * o_blk + 2 * w_bytes + slab_bytes + acc_bytes + (1 << 20)
    vmem_limit = int(min(max(2 * est_vmem, 32 << 20), 56 << 20))

    flops = 2 * N * H * W * Kc_pad * Cout_p
    bytes_accessed = (x_t.size * 2 + w.size * 2 + (scale.size + bias.size) * 4
                      + N * H * W * Cout_p * 2)

    out = pl.pallas_call(
        kernel,
        out_shape=jax.ShapeDtypeStruct((N, H, W, Cout_p), jnp.bfloat16),
        grid_spec=pltpu.PrefetchScalarGridSpec(
            num_scalar_prefetch=0,
            grid=(N, n_tiles),
            in_specs=[
                # per-(n, t) halo row tile; channel dim stays unpadded (full-dim block)
                pl.BlockSpec((1, 1, THp, Wp, Cin), lambda n, t: (n, t, 0, 0, 0)),
                pl.BlockSpec((Kc_pad, Cout_p), lambda n, t: (0, 0)),
                pl.BlockSpec((1, Cout_p), lambda n, t: (0, 0)),
                pl.BlockSpec((1, Cout_p), lambda n, t: (0, 0)),
            ],
            out_specs=pl.BlockSpec((1, tile_h, W, Cout_p),
                                   lambda n, t: (n, t, 0, 0)),
        ),
        compiler_params=pltpu.CompilerParams(
            dimension_semantics=("parallel", "parallel"),
            vmem_limit_bytes=vmem_limit),
        cost_estimate=pl.CostEstimate(flops=int(flops), transcendentals=0,
                                      bytes_accessed=int(bytes_accessed)),
    )(x_t, w, scale, bias)

    # Slice the channel padding off BEFORE the transpose materializes; if the
    # consumer is another ConvBlock, prefer returning `out` (padded NHWC bf16).
    return jnp.transpose(out[..., :Cout], (0, 3, 1, 2)).astype(jnp.float32)


def conv_block_reference(x_nchw, weight, gamma, beta, mean, var, *, eps=1e-5):
    """Pure-JAX reference matching the kernel's bf16-in / f32-accum / bf16-out numerics."""
    x = jnp.transpose(x_nchw, (0, 2, 3, 1)).astype(jnp.bfloat16)
    w = jnp.transpose(weight, (2, 3, 1, 0)).astype(jnp.bfloat16)
    y = jax.lax.conv_general_dilated(
        x, w, (1, 1), 'SAME',
        dimension_numbers=('NHWC', 'HWIO', 'NHWC'),
        preferred_element_type=jnp.float32)
    scale = gamma / jnp.sqrt(var + eps)
    bias = beta - mean * scale
    y = jnp.maximum(y * scale + bias, 0.0)
    y = y.astype(jnp.bfloat16).astype(jnp.float32)
    return jnp.transpose(y, (0, 3, 1, 2))


if __name__ == "__main__":
    # ConvBlock(input=4, output=4, kernel_size=3): Conv3x3 s1 p1 -> BN -> ReLU.
    N, Cin, Cout, H, W, K = 2, 4, 4, 16, 16, 3
    key = jax.random.PRNGKey(0)
    ks = jax.random.split(key, 6)

    x = jax.random.normal(ks[0], (N, Cin, H, W), jnp.float32)
    w = 0.1 * jax.random.normal(ks[1], (Cout, Cin, K, K), jnp.float32)
    gamma = 1.0 + 0.1 * jax.random.normal(ks[2], (Cout,), jnp.float32)
    beta = 0.1 * jax.random.normal(ks[3], (Cout,), jnp.float32)
    mean = 0.05 * jax.random.normal(ks[4], (Cout,), jnp.float32)
    var = 1.0 + 0.1 * jnp.abs(jax.random.normal(ks[5], (Cout,), jnp.float32))

    out = conv_block_pallas(x, w, gamma, beta, mean, var)
    out = jax.block_until_ready(out)

    ref = jax.block_until_ready(conv_block_reference(x, w, gamma, beta, mean, var))
    assert out.shape == (N, Cout, H, W)
    assert jnp.max(jnp.abs(out - ref)) < 5e-2, "Pallas result mismatch vs reference"

    print("KERNEL_OK")
</pallas_src>

<mosaic_0001>
module attributes {stable_mosaic.version = 11 : i64} {
  func.func @_convblock_kernel(%arg0: i32, %arg1: i32, %arg2: memref<1x1x18x18x4xbf16, #tpu.memory_space<vmem>>, %arg3: memref<128x128xbf16, #tpu.memory_space<vmem>>, %arg4: memref<1x128xf32, #tpu.memory_space<vmem>>, %arg5: memref<1x128xf32, #tpu.memory_space<vmem>>, %arg6: memref<1x16x16x128xbf16, #tpu.memory_space<vmem>>) attributes {dimension_semantics = [#tpu.dimension_semantics<parallel>, #tpu.dimension_semantics<parallel>], iteration_bounds = array<i64: 2, 1>, scalar_prefetch = 0 : i64, scratch_operands = 0 : i64, tpu.core_type = #tpu.core_type<tc>, window_params = [{transform_indices = @transform_0, window_bounds = array<i64: 1, 1, 18, 18, 4>}, {pipeline_mode = #tpu.pipeline_mode<synchronous>, transform_indices = @transform_1, window_bounds = array<i64: 128, 128>}, {pipeline_mode = #tpu.pipeline_mode<synchronous>, transform_indices = @transform_2, window_bounds = array<i64: 1, 128>}, {pipeline_mode = #tpu.pipeline_mode<synchronous>, transform_indices = @transform_3, window_bounds = array<i64: 1, 128>}, {transform_indices = @transform_4, window_bounds = array<i64: 1, 16, 16, 128>}]} {
    %c0 = arith.constant 0 : index
    %c0_0 = arith.constant 0 : index
    %c0_1 = arith.constant 0 : index
    %c0_2 = arith.constant 0 : index
    %c0_3 = arith.constant 0 : index
    %0 = vector.load %arg2[%c0, %c0_0, %c0_1, %c0_2, %c0_3] : memref<1x1x18x18x4xbf16, #tpu.memory_space<vmem>>, vector<1x1x18x18x4xbf16>
    %1 = vector.shape_cast %0 : vector<1x1x18x18x4xbf16> to vector<18x18x4xbf16>
    %2 = vector.extract_strided_slice %1 {offsets = [0, 0, 0], sizes = [16, 16, 4], strides = [1, 1, 1]} : vector<18x18x4xbf16> to vector<16x16x4xbf16>
    %3 = vector.extract_strided_slice %1 {offsets = [0, 1, 0], sizes = [16, 16, 4], strides = [1, 1, 1]} : vector<18x18x4xbf16> to vector<16x16x4xbf16>
    %4 = vector.extract_strided_slice %1 {offsets = [0, 2, 0], sizes = [16, 16, 4], strides = [1, 1, 1]} : vector<18x18x4xbf16> to vector<16x16x4xbf16>
    %5 = vector.extract_strided_slice %1 {offsets = [1, 0, 0], sizes = [16, 16, 4], strides = [1, 1, 1]} : vector<18x18x4xbf16> to vector<16x16x4xbf16>
    %6 = vector.extract_strided_slice %1 {offsets = [1, 1, 0], sizes = [16, 16, 4], strides = [1, 1, 1]} : vector<18x18x4xbf16> to vector<16x16x4xbf16>
    %7 = vector.extract_strided_slice %1 {offsets = [1, 2, 0], sizes = [16, 16, 4], strides = [1, 1, 1]} : vector<18x18x4xbf16> to vector<16x16x4xbf16>
    %8 = vector.extract_strided_slice %1 {offsets = [2, 0, 0], sizes = [16, 16, 4], strides = [1, 1, 1]} : vector<18x18x4xbf16> to vector<16x16x4xbf16>
    %9 = vector.extract_strided_slice %1 {offsets = [2, 1, 0], sizes = [16, 16, 4], strides = [1, 1, 1]} : vector<18x18x4xbf16> to vector<16x16x4xbf16>
    %10 = vector.extract_strided_slice %1 {offsets = [2, 2, 0], sizes = [16, 16, 4], strides = [1, 1, 1]} : vector<18x18x4xbf16> to vector<16x16x4xbf16>
    %cst = arith.constant 0.000000e+00 : bf16
    %11 = vector.broadcast %cst : bf16 to vector<16x16x92xbf16>
    %12 = tpu.concatenate %2, %3, %4, %5, %6, %7, %8, %9, %10, %11 in 2 : vector<16x16x4xbf16>, vector<16x16x4xbf16>, vector<16x16x4xbf16>, vector<16x16x4xbf16>, vector<16x16x4xbf16>, vector<16x16x4xbf16>, vector<16x16x4xbf16>, vector<16x16x4xbf16>, vector<16x16x4xbf16>, vector<16x16x92xbf16> -> vector<16x16x128xbf16>
    %13 = vector.shape_cast %12 : vector<16x16x128xbf16> to vector<256x128xbf16>
    %c0_4 = arith.constant 0 : index
    %c0_5 = arith.constant 0 : index
    %14 = vector.load %arg3[%c0_4, %c0_5] : memref<128x128xbf16, #tpu.memory_space<vmem>>, vector<128x128xbf16>
    %cst_6 = arith.constant dense<0.000000e+00> : vector<256x128xf32>
    %15 = tpu.matmul %13, %14, %cst_6 {dimension_numbers = #tpu.dot_dimension_numbers<[1], [0], [0], [1], [0, 0, 1, 1], [], []>} : vector<256x128xbf16>, vector<128x128xbf16>, vector<256x128xf32> -> vector<256x128xf32>
    %c0_7 = arith.constant 0 : index
    %c0_8 = arith.constant 0 : index
    %16 = vector.load %arg4[%c0_7, %c0_8] : memref<1x128xf32, #tpu.memory_space<vmem>>, vector<1x128xf32>
    %17 = vector.broadcast %16 : vector<1x128xf32> to vector<256x128xf32>
    %18 = arith.mulf %15, %17 : vector<256x128xf32>
    %c0_9 = arith.constant 0 : index
    %c0_10 = arith.constant 0 : index
    %19 = vector.load %arg5[%c0_9, %c0_10] : memref<1x128xf32, #tpu.memory_space<vmem>>, vector<1x128xf32>
    %20 = vector.broadcast %19 : vector<1x128xf32> to vector<256x128xf32>
    %21 = arith.addf %18, %20 : vector<256x128xf32>
    %cst_11 = arith.constant 0.000000e+00 : f32
    %22 = vector.broadcast %cst_11 : f32 to vector<256x128xf32>
    %23 = arith.maximumf %21, %22 : vector<256x128xf32>
    %24 = vector.shape_cast %23 : vector<256x128xf32> to vector<16x16x128xf32>
    %25 = arith.truncf %24 : vector<16x16x128xf32> to vector<16x16x128xbf16>
    %c0_12 = arith.constant 0 : index
    %c0_13 = arith.constant 0 : index
    %c0_14 = arith.constant 0 : index
    %c0_15 = arith.constant 0 : index
    %26 = vector.load %arg6[%c0_12, %c0_13, %c0_14, %c0_15] : memref<1x16x16x128xbf16, #tpu.memory_space<vmem>>, vector<1x16x16x128xbf16>
    %27 = vector.shape_cast %26 : vector<1x16x16x128xbf16> to vector<16x16x128xbf16>
    %28 = vector.shape_cast %25 : vector<16x16x128xbf16> to vector<1x16x16x128xbf16>
    tpu.vector_store %arg6[%c0_12, %c0_13, %c0_14, %c0_15], %28 {strides = array<i32>} : memref<1x16x16x128xbf16, #tpu.memory_space<vmem>>, vector<1x16x16x128xbf16>,
    return
  }
  func.func @transform_0(%arg0: i32, %arg1: i32) -> (i32, i32, i32, i32, i32) {
    %c0_i32 = arith.constant 0 : i32
    %c0_i32_0 = arith.constant 0 : i32
    %c0_i32_1 = arith.constant 0 : i32
    %c0_i32_2 = arith.constant 0 : i32
    return %arg0, %arg1, %c0_i32, %c0_i32_0, %c0_i32_1 : i32, i32, i32, i32, i32
  }
  func.func @transform_1(%arg0: i32, %arg1: i32) -> (i32, i32) {
    %c0_i32 = arith.constant 0 : i32
    %c0_i32_0 = arith.constant 0 : i32
    %c0_i32_1 = arith.constant 0 : i32
    return %c0_i32, %c0_i32_0 : i32, i32
  }
  func.func @transform_2(%arg0: i32, %arg1: i32) -> (i32, i32) {
    %c0_i32 = arith.constant 0 : i32
    %c0_i32_0 = arith.constant 0 : i32
    %c0_i32_1 = arith.constant 0 : i32
    return %c0_i32, %c0_i32_0 : i32, i32
  }
  func.func @transform_3(%arg0: i32, %arg1: i32) -> (i32, i32) {
    %c0_i32 = arith.constant 0 : i32
    %c0_i32_0 = arith.constant 0 : i32
    %c0_i32_1 = arith.constant 0 : i32
    return %c0_i32, %c0_i32_0 : i32, i32
  }
  func.func @transform_4(%arg0: i32, %arg1: i32) -> (i32, i32, i32, i32) {
    %c0_i32 = arith.constant 0 : i32
    %c0_i32_0 = arith.constant 0 : i32
    %c0_i32_1 = arith.constant 0 : i32
    return %arg0, %arg1, %c0_i32, %c0_i32_0 : i32, i32, i32, i32
  }
}

</mosaic_0001>

<bundles_post_ra>
// kernel: tpu_custom_call.1
= control target key start
LH: loop header
LB: loop body
LE: loop exit
PB: predicated region body
PF: predicated region fallthrough
CT: control target
= control target key end

     0   :  { %9 = vsyncpa [#allocation3], 0  ;;  %s3298_s0 = inlined_call_operand.vmem [shape: bf16[2,1,18,18,4], index: 0, kind: input, shape index: {}]   ;;  %s3299_s1 = inlined_call_operand.vmem [shape: bf16[128,128], index: 1, kind: input, shape index: {}]   ;;  %s3300_s2 = inlined_call_operand.vmem [shape: f32[1,128], index: 2, kind: input, shape index: {}]   ;;  %s3301_s3 = inlined_call_operand.vmem [shape: f32[1,128], index: 3, kind: input, shape index: {}]   ;;  %s3302_s4 = inlined_call_operand.hbm [shape: bf16[2,16,16,128], index: 4, kind: output, shape index: {}]  }
   0x1   :  { %11 = vsyncpa [#allocation3 + $0x1], 0  ;;  %s2392_s15 = smov 0   ;;  %s2394_s16 = smov 0  }
   0x2   :  { %s2396_s17 = smov 0   ;;  %s2398_s18 = smov 0  }
   0x3   :  { %s2400_s19 = smov 0   ;;  %s2402_s20 = smov 0  }
   0x4 LB: > { %s1844_s21 = sadd.s32 4294967295, %s2355_s20   ;;  %s1845_s22 = sadd.s32 4294967294, %s2355_s20   ;;  %s2355_s20 = sphi %s2402_s20, %s17_s20   ;;  %s2351_s19 = sphi %s2400_s19, %s3309_s19   ;;  %s2347_s18 = sphi %s2398_s18, %s3308_s18   ;;  %s2343_s17 = sphi %s2396_s17, %s3307_s17   ;;  %s2339_s16 = sphi %s2394_s16, %s3306_s16   ;;  %s2335_s15 = sphi %s2392_s15, %s3305_s15  }
   0x5   : > { %s29_s23 = sadd.s32 1, %s2351_s19  ;;  %s129_s24 = sadd.s32 1, %s2343_s17 }
   0x6   : > { %p31_p0 = scmp.ge.s32.totalorder %s29_s23, 2  ;;  %p139_p1 = scmp.ne.s32.totalorder %s2343_s17, %s2339_s16 }
   0x7   : > { %p140_p2 = scmp.eq.s32.totalorder %s1844_s21, 1  ;;  %p145_p3 = scmp.ne.s32.totalorder %s2339_s16, %s2335_s15 }
   0x8   : > { %s3311_s23 = smov (%p31_p0, %s29_s23), 0  ;;  %p146_p5 = scmp.eq.s32.totalorder %s1845_s22, 1 }
   0x9   : > { %p2432_p4 = por %p140_p2, %p139_p1  ;;  %s124_s26 = ssub.s32 %s2351_s19, %s3311_s23 }
   0xa   : > { %p1848_p6 = scmp.ge.s32.totalorder %s2355_s20, 1  ;;  %p127_p7 = scmp.eq.s32.totalorder %s124_s26, 0 }
   0xb   : > { %p2439_p8 = por %p146_p5, %p145_p3  ;;  %p185_p9 = scmp.lt.s32.totalorder %s2355_s20, 3 }
   0xc   : > { %s2445_s28 = scalar_select %p127_p7, %s2343_s17, %s129_s24  }
   0xd   : > { %p186_p10 = pnand %p1848_p6, %p185_p9 }
   0xe   : > { %p215_p11 = scmp.lt.s32.totalorder (!%p186_p10), %s2347_s18, 1  ;;  %vm633_vm0 = vcmask (!%p186_p10), 1046528   ;;  %s2357_s8 = smov (!%p186_p10), 12   ;;  %vm408_vm1 = vsmask.f32 (!%p186_p10), 7424  ;;  %v2255_v62 = vld [vmem:[%s3299_s1] sm:$0xff] (!%p186_p10)  }
   0xf   : > { %189 = sbr.rel (%p186_p10) target bundleno = 635 (0x27b), region = 36  ;;  %s2358_s9 = smov (!%p186_p10), 8   ;;  %2102 = vmatprep.subr.bf16.mxu0 (!%p186_p10), %v2255_v62  ;;  %2150 = vmatprep.subr.bf16.mxu1 (!%p186_p10), %v2255_v62  ;;  %vm952_vm2 = vcmask (!%p186_p10), 31744   ;;  %vm985_vm3 = vcmask (!%p186_p10), 64512   ;;  %vm1051_vm4 = vcmask (!%p186_p10), 130048   ;;  %vm1018_vm5 = vcmask (!%p186_p10), 97280  }
  0x10   : > { %s2359_s10 = smov (!%p186_p10), 4   ;;  %s2360_s13 = smov (!%p186_p10), 16   ;;  %2103 = vmatpush3.bf16.msra.mxu0 (!%p186_p10), %v2255_v62  ;;  %2158 = vmatpush3.bf16.msra.mxu1 (!%p186_p10), %v2255_v62  ;;  %vm1084_vm6 = vcmask (!%p186_p10), 162816   ;;  %vm1117_vm7 = vcmask (!%p186_p10), 195584   ;;  %vm1150_vm8 = vcmask (!%p186_p10), 228352   ;;  %vm1183_vm9 = vcmask (!%p186_p10), 261120  }
  0x11   : > { %s2361_s22 = smov (!%p186_p10), 20   ;;  %s2362_s11 = smov (!%p186_p10), 24   ;;  %vm1216_vm10 = vcmask (!%p186_p10), 293888  }
  0x12   : > { %s2363_s26 = smov (!%p186_p10), 28   ;;  %s2364_s5 = smov (!%p186_p10), 32  }
  0x13   : > { %s1982_s12 = sshll.u32 (!%p186_p10), %s2347_s18, 11 }
  0x16   : > { %s216_s29 = scalar_select %p215_p11, %s2347_s18, 1 }
  0x18   : > { %s2166_s30 = smul.u32 216, %s216_s29 }
  0x1a   : > { %s2452_s7 = scalar_lea.vmem %s3298_s0, %s2166_s30  ;;  %s2365_s30 = smov [#allocation2]  }
  0x1b   : > { %v2455_v0 = vld [vmem:[%s2452_s7 + $0x6c] sm:$0xff]   ;;  %v2465_v2 = vld [vmem:[%s2452_s7 + $0x60] sm:$0xff]   ;;  %v2234_v3 = vld [vmem:[%s2452_s7 + $0x68] ss:$0 sps:$4 sm:$0x11]  }
  0x1c   : > { %v2458_v1 = vld [vmem:[%s2452_s7 + $0xc] sm:$0xff]   ;;  %735 = vrot.lane.b32.xlu1 %v2455_v0, %s2357_s8  ;;  %v2469_v4 = vld [vmem:[%s2452_s7] sm:$0xff]   ;;  %v661_v5 = vrot.slane %v2455_v0, 1  ;;  %v658_v6 = vrot.slane %v2465_v2, 1  ;;  %v659_v7 = vrot.slane %v2234_v3, 1  ;;  %v518_v26 = vshrl.u32 %v2455_v0, 16 }
  0x1d   : > { %719 = vrot.lane.b32.xlu0 %v2458_v1, %s2357_s8  ;;  %v2236_v8 = vld [vmem:[%s2452_s7 + $0x8] ss:$0 sps:$4 sm:$0x11]   ;;  %v637_v9 = vrot.slane %v2458_v1, 1  ;;  %v634_v10 = vrot.slane %v2469_v4, 1  ;;  %v422_v16 = vshrl.u32 %v2458_v1, 16 }
  0x1e   : > { %v2237_v11 = vld [vmem:[%s2452_s7 + $0x74] ss:$0 sps:$4 sm:$0x11]   ;;  %v2478_v12 = vsel %vm633_vm0, %v658_v6, %v659_v7  ;;  %v635_v13 = vrot.slane %v2236_v8, 1  ;;  %v424_v17 = vshll.u32 %v2458_v1, 16  ;;  %v410_v18 = vshrl.u32 %v2469_v4, 16 }
  0x1f   : > { %v2238_v14 = vld [vmem:[%s2452_s7 + $0x14] ss:$0 sps:$4 sm:$0x11]   ;;  %v662_v15 = vrot.slane %v2237_v11, 1  ;;  %v412_v22 = vshll.u32 %v2469_v4, 16  ;;  %v417_v25 = vshll.u32 %v2236_v8, 16 }
  0x20   : > { %698 = vrot.lane.b32.xlu1 %v2478_v12, %s2358_s9  ;;  %v636_v19 = vsel %vm633_vm0, %v634_v10, %v635_v13  ;;  %v638_v20 = vrot.slane %v2238_v14, 1  ;;  %v429_v21 = vshll.u32 %v2238_v14, 16  ;;  %v426_v24 = vrot.slane %v424_v17, 1  ;;  %v2502_v39 = vld [vmem:[%s2452_s7 + $0x78] sm:$0xff]   ;;  %v2555_v13 = vld [vmem:[%s2452_s7 + $0x84] sm:$0xff]  }
  0x21   : > { %682 = vrot.lane.b32.xlu0 %v636_v19, %s2358_s9  ;;  %v2490_v23 = vsel %vm633_vm0, %v661_v5, %v662_v15  ;;  %v414_v29 = vrot.slane %v412_v22, 1  ;;  %v520_v30 = vshll.u32 %v2455_v0, 16  ;;  %v419_v32 = vrot.slane %v417_v25, 1  ;;  %v2509_v46 = vld [vmem:[%s2452_s7 + $0x18] sm:$0xff]   ;;  %v2558_v14 = vld [vmem:[%s2452_s7 + $0x24] sm:$0xff]   ;;  %v2259_v15 = vld [vmem:[%s3299_s1 + $0x10] sm:$0xff]  }
  0x22   : > { %v2494_v27 = vsel %vm633_vm0, %v637_v9, %v638_v20  ;;  %v431_v28 = vrot.slane %v429_v21, 1  ;;  %v427_v31 = vor.u32 %v426_v24, %v422_v16  ;;  %v525_v33 = vshll.u32 %v2237_v11, 16  ;;  %v2241_v47 = vld [vmem:[%s2452_s7 + $0x80] ss:$0 sps:$4 sm:$0x11]   ;;  %v2258_v9 = vld [vmem:[%s3299_s1 + $0x8] sm:$0xff]  }
  0x23   : > { %v506_v34 = vshrl.u32 %v2465_v2, 16  ;;  %v415_v35 = vor.u32 %v414_v29, %v410_v18  ;;  %v522_v36 = vrot.slane %v520_v30, 1  ;;  %v508_v37 = vshll.u32 %v2465_v2, 16  ;;  %v2242_v52 = vld [vmem:[%s2452_s7 + $0x20] ss:$0 sps:$4 sm:$0x11]   ;;  %2104 = vmatprep.subr.bf16.mxu0 %v2258_v9  ;;  %2151 = vmatprep.subr.bf16.mxu1 %v2258_v9 }
  0x24   : > { %700 = vrot.lane.b32.xlu1 %v2490_v23, %s2358_s9  ;;  %v513_v38 = vshll.u32 %v2234_v3, 16  ;;  %v432_v40 = vsel %vm408_vm1, %v427_v31, %v431_v28  ;;  %v527_v41 = vrot.slane %v525_v33, 1  ;;  %v532_v50 = vshll.u32 %v2502_v39, 16  ;;  %2105 = vmatpush3.bf16.msra.mxu0 %v2258_v9  ;;  %v2571_v17 = vld [vmem:[%s2452_s7 + $0x8c] ss:$0 sps:$4 sm:$0x11]  }
  0x25   : > { %684 = vrot.lane.b32.xlu0 %v2494_v27, %s2358_s9  ;;  %v420_v42 = vsel %vm408_vm1, %v415_v35, %v419_v32  ;;  %v523_v43 = vor.u32 %v522_v36, %v518_v26  ;;  %v510_v44 = vrot.slane %v508_v37, 1  ;;  %v436_v53 = vshll.u32 %v2509_v46, 16  ;;  %2159 = vmatpush3.bf16.msra.mxu1 %v2258_v9  ;;  %v2262_v18 = vld [vmem:[%s3299_s1 + $0x18] sm:$0xff]   ;;  %v2246_v22 = vld [vmem:[%s2452_s7 + $0x2c] ss:$0 sps:$4 sm:$0x11]  }
  0x26   : > { %v515_v45 = vrot.slane %v513_v38, 1  ;;  %v530_v54 = vshrl.u32 %v2502_v39, 16  ;;  %v534_v55 = vrot.slane %v532_v50, 1  ;;  %v537_v56 = vshll.u32 %v2241_v47, 16  ;;  %2106 = vmatprep.subr.bf16.mxu0 %v2259_v15  ;;  %2152 = vmatprep.subr.bf16.mxu1 %v2259_v15  ;;  %v2263_v24 = vld [vmem:[%s3299_s1 + $0x20] sm:$0xff]   ;;  %v2264_v31 = vld [vmem:[%s3299_s1 + $0x28] sm:$0xff]  }
  0x27   : > { %v2514_v48 = vsel %vm408_vm1, %v523_v43, %v527_v41  ;;  %v511_v49 = vor.u32 %v510_v44, %v506_v34  ;;  %v434_v57 = vshrl.u32 %v2509_v46, 16  ;;  %v438_v58 = vrot.slane %v436_v53, 1  ;;  %v2265_v34 = vld [vmem:[%s3299_s1 + $0x30] sm:$0xff]   ;;  %v2268_v38 = vld [vmem:[%s3299_s1 + $0x38] sm:$0xff]  }
  0x28   : > { %603 = vrot.lane.b32.xlu1 %v432_v40, %s2359_s10  ;;  %v441_v59 = vshll.u32 %v2242_v52, 16  ;;  %v535_v60 = vor.u32 %v534_v55, %v530_v54  ;;  %v539_v61 = vrot.slane %v537_v56, 1  ;;  %v664_v7 = vrot.slane %v2502_v39, 1  ;;  %2107 = vmatpush3.bf16.msra.mxu0 %v2259_v15  ;;  %v2642_v50 = vld [vmem:[%s2452_s7 + $0x30] sm:$0xff]  }
  0x29   : > { %601 = vrot.lane.b32.xlu0 %v420_v42, %s2359_s10  ;;  %v2519_v51 = vsel %vm408_vm1, %v511_v49, %v515_v45  ;;  %v439_v63 = vor.u32 %v438_v58, %v434_v57  ;;  %v665_v8 = vrot.slane %v2241_v47, 1  ;;  %v640_v10 = vrot.slane %v2509_v46, 1  ;;  %2160 = vmatpush3.bf16.msra.mxu1 %v2259_v15  ;;  %v2637_v49 = vld [vmem:[%s2452_s7 + $0x90] sm:$0xff]   ;;  %v2250_v54 = vld [vmem:[%s2452_s7 + $0x38] ss:$0 sps:$4 sm:$0x11]  }
  0x2a   : > { %v443_v3 = vrot.slane %v441_v59, 1  ;;  %v2539_v5 = vsel %vm408_vm1, %v535_v60, %v539_v61  ;;  %v641_v11 = vrot.slane %v2242_v52, 1  ;;  %v544_v20 = vshll.u32 %v2555_v13, 16  ;;  %2108 = vmatprep.subr.bf16.mxu0 %v2262_v18  ;;  %2153 = vmatprep.subr.bf16.mxu1 %v2262_v18  ;;  %v2249_v52 = vld [vmem:[%s2452_s7 + $0x98] ss:$0 sps:$4 sm:$0x11]  }
  0x2b   : > { %v2566_v16 = vsel %vm633_vm0, %v664_v7, %v665_v8  ;;  %v448_v21 = vshll.u32 %v2558_v14, 16  ;;  %v542_v25 = vshrl.u32 %v2555_v13, 16  ;;  %v549_v26 = vshll.u32 %v2571_v17, 16 }
  0x2c   : > { %619 = vrot.lane.b32.xlu1 %v2514_v48, %s2359_s10  ;;  %v2543_v6 = vsel %vm408_vm1, %v439_v63, %v443_v3  ;;  %v2577_v19 = vsel %vm633_vm0, %v640_v10, %v641_v11  ;;  %v546_v28 = vrot.slane %v544_v20, 1  ;;  %v453_v30 = vshll.u32 %v2246_v22, 16  ;;  %2109 = vmatpush3.bf16.msra.mxu0 %v2262_v18 }
  0x2d   : > { %617 = vrot.lane.b32.xlu0 %v2519_v51, %s2359_s10  ;;  %v450_v29 = vrot.slane %v448_v21, 1  ;;  %2161 = vmatpush3.bf16.msra.mxu1 %v2262_v18  ;;  %v551_v33 = vrot.slane %v549_v26, 1  ;;  %v667_v41 = vrot.slane %v2555_v13, 1  ;;  %v668_v42 = vrot.slane %v2571_v17, 1  ;;  %v2676_v18 = vld [vmem:[%s2452_s7 + $0x3c] sm:$0xff]  }
  0x2e   : > { %2110 = vmatprep.subr.bf16.mxu0 %v2263_v24  ;;  %2154 = vmatprep.subr.bf16.mxu1 %v2263_v24  ;;  %v547_v32 = vor.u32 %v546_v28, %v542_v25  ;;  %v455_v36 = vrot.slane %v453_v30, 1  ;;  %v643_v43 = vrot.slane %v2558_v14, 1  ;;  %v644_v44 = vrot.slane %v2246_v22, 1  ;;  %v2254_v21 = vld [vmem:[%s2452_s7 + $0x44] ss:$0 sps:$4 sm:$0x11]  }
  0x2f   : > { %v669_v45 = vsel %vm633_vm0, %v667_v41, %v668_v42  ;;  %v556_v53 = vshll.u32 %v2637_v49, 16  ;;  %v460_v55 = vshll.u32 %v2642_v50, 16  ;;  %v554_v56 = vshrl.u32 %v2637_v49, 16 }
  0x30   : > { %737 = vrot.lane.b32.xlu1 %v2502_v39, %s2357_s8  ;;  %2111 = vmatpush3.bf16.msra.mxu0 %v2263_v24  ;;  %v552_v37 = vsel %vm408_vm1, %v547_v32, %v551_v33  ;;  %v645_v47 = vsel %vm633_vm0, %v643_v43, %v644_v44  ;;  %v561_v58 = vshll.u32 %v2249_v52, 16  ;;  %v458_v59 = vshrl.u32 %v2642_v50, 16 }
  0x31   : > { %721 = vrot.lane.b32.xlu0 %v2509_v46, %s2357_s8  ;;  %2162 = vmatpush3.bf16.msra.mxu1 %v2263_v24  ;;  %v558_v57 = vrot.slane %v556_v53, 1  ;;  %v462_v60 = vrot.slane %v460_v55, 1  ;;  %v465_v61 = vshll.u32 %v2250_v54, 16  ;;  %v670_v8 = vrot.slane %v2637_v49, 1 }
  0x32   : > { %2112 = vmatprep.subr.bf16.mxu0 %v2264_v31  ;;  %2155 = vmatprep.subr.bf16.mxu1 %v2264_v31  ;;  %v563_v63 = vrot.slane %v561_v58, 1  ;;  %v671_v9 = vrot.slane %v2249_v52, 1  ;;  %v646_v10 = vrot.slane %v2642_v50, 1  ;;  %v647_v11 = vrot.slane %v2250_v54, 1 }
  0x33   : > { %v559_v62 = vor.u32 %v558_v57, %v554_v56  ;;  %v463_v3 = vor.u32 %v462_v60, %v458_v59  ;;  %v472_v22 = vshll.u32 %v2676_v18, 16  ;;  %v649_v44 = vrot.slane %v2676_v18, 1  ;;  %v2737_v60 = vld [vmem:[%s2452_s7 + $0xa8] sm:$0xff]  }
  0x34   : > { %782 = vrot.lane.b32.xlu1 %v2514_v48, %s2360_s13  ;;  %2113 = vmatpush3.bf16.msra.mxu0 %v2264_v31  ;;  %v672_v15 = vsel %vm633_vm0, %v670_v8, %v671_v9  ;;  %v648_v17 = vsel %vm633_vm0, %v646_v10, %v647_v11  ;;  %v578_v10 = vshrl.u32 %v2737_v60, 16 }
  0x35   : > { %766 = vrot.lane.b32.xlu0 %v432_v40, %s2360_s13  ;;  %2163 = vmatpush3.bf16.msra.mxu1 %v2264_v31  ;;  %v474_v28 = vrot.slane %v472_v22, 1 }
  0x36   : > { %2114 = vmatprep.subr.bf16.mxu0 %v2265_v34  ;;  %2156 = vmatprep.subr.bf16.mxu1 %v2265_v34 }
  0x38   : > { %784 = vrot.lane.b32.xlu1 %v2539_v5, %s2360_s13  ;;  %2115 = vmatpush3.bf16.msra.mxu0 %v2265_v34 }
  0x39   : > { %768 = vrot.lane.b32.xlu0 %v2543_v6, %s2360_s13  ;;  %2164 = vmatpush3.bf16.msra.mxu1 %v2265_v34 }
  0x3a   : > { %2116 = vmatprep.subr.bf16.mxu0 %v2268_v38  ;;  %2157 = vmatprep.subr.bf16.mxu1 %v2268_v38 }
  0x3c   : > { %817 = vrot.lane.b32.xlu1 %v2490_v23, %s2361_s22  ;;  %2117 = vmatpush3.bf16.msra.mxu0 %v2268_v38 }
  0x3d   : > { %801 = vrot.lane.b32.xlu0 %v2494_v27, %s2361_s22  ;;  %v446_v27 = vshrl.u32 %v2558_v14, 16  ;;  %2165 = vmatpush3.bf16.msra.mxu1 %v2268_v38 }
  0x3f   : > { %v451_v35 = vor.u32 %v450_v29, %v446_v27  ;;  %v470_v27 = vshrl.u32 %v2676_v18, 16  ;;  %v477_v29 = vshll.u32 %v2254_v21, 16 }
  0x40   : > { %819 = vrot.lane.b32.xlu1 %v2566_v16, %s2361_s22 }
  0x41   : > { %803 = vrot.lane.b32.xlu0 %v2577_v19, %s2361_s22  ;;  %v456_v40 = vsel %vm408_vm1, %v451_v35, %v455_v36  ;;  %v475_v32 = vor.u32 %v474_v28, %v470_v27  ;;  %v479_v33 = vrot.slane %v477_v29, 1 }
  0x44   : > { %854 = vrot.lane.b32.xlu1 %v2502_v39, %s2362_s11 }
  0x45   : > { %838 = vrot.lane.b32.xlu0 %v2509_v46, %s2362_s11 }
  0x48   : > { %856 = vrot.lane.b32.xlu1 %v2555_v13, %s2362_s11 }
  0x49   : > { %840 = vrot.lane.b32.xlu0 %v2558_v14, %s2362_s11 }
  0x4c   : > { %901 = vrot.lane.b32.xlu1 %v2539_v5, %s2363_s26 }
  0x4d   : > { %885 = vrot.lane.b32.xlu0 %v2543_v6, %s2363_s26 }
  0x50   : > { %903 = vrot.lane.b32.xlu1 %v552_v37, %s2363_s26 }
  0x51   : > { %887 = vrot.lane.b32.xlu0 %v456_v40, %s2363_s26 }
  0x54   : > { %936 = vrot.lane.b32.xlu1 %v2566_v16, %s2364_s5 }
  0x55   : > { %920 = vrot.lane.b32.xlu0 %v2577_v19, %s2364_s5 }
  0x58   : > { %621 = vrot.lane.b32.xlu1 %v2539_v5, %s2359_s10  ;;  %v467_v5 = vrot.slane %v465_v61, 1 }
  0x59   : > { %605 = vrot.lane.b32.xlu0 %v2543_v6, %s2359_s10  ;;  %v564_v6 = vsel %vm408_vm1, %v559_v62, %v563_v63  ;;  %v2743_v62 = vld [vmem:[%s2452_s7 + $0x48] sm:$0xff]  }
  0x5a   : > { %v468_v7 = vsel %vm408_vm1, %v463_v3, %v467_v5  ;;  %v2260_v3 = vld [vmem:[%s2452_s7 + $0xb0] ss:$0 sps:$4 sm:$0x11]   ;;  %v580_v5 = vshll.u32 %v2737_v60, 16  ;;  %v484_v8 = vshll.u32 %v2743_v62, 16 }
  0x5c   : > { %938 = vrot.lane.b32.xlu1 %v669_v45, %s2364_s5  ;;  %v582_v11 = vrot.slane %v580_v5, 1 }
  0x5d   : > { %922 = vrot.lane.b32.xlu0 %v645_v47, %s2364_s5 }
  0x60   : > { %623 = vrot.lane.b32.xlu1 %v552_v37, %s2359_s10 }
  0x61   : > { %607 = vrot.lane.b32.xlu0 %v456_v40, %s2359_s10 }
  0x64   : > { %702 = vrot.lane.b32.xlu1 %v2566_v16, %s2358_s9  ;;  %v2671_v16 = vld [vmem:[%s2452_s7 + $0x9c] sm:$0xff]  }
  0x65   : > { %686 = vrot.lane.b32.xlu0 %v2577_v19, %s2358_s9  ;;  %v2253_v19 = vld [vmem:[%s2452_s7 + $0xa4] ss:$0 sps:$4 sm:$0x11]   ;;  %v568_v20 = vshll.u32 %v2671_v16, 16  ;;  %v566_v24 = vshrl.u32 %v2671_v16, 16  ;;  %v673_v41 = vrot.slane %v2671_v16, 1 }
  0x66   : > { %v573_v26 = vshll.u32 %v2253_v19, 16  ;;  %v674_v42 = vrot.slane %v2253_v19, 1  ;;  %v482_v19 = vshrl.u32 %v2743_v62, 16 }
  0x67   : > { %v570_v25 = vrot.slane %v568_v20, 1  ;;  %v486_v20 = vrot.slane %v484_v8, 1  ;;  %v2799_v8 = vld [vmem:[%s2452_s7 + $0xb4] sm:$0xff]  }
  0x68   : > { %704 = vrot.lane.b32.xlu1 %v669_v45, %s2358_s9  ;;  %v575_v31 = vrot.slane %v573_v26, 1  ;;  %v675_v52 = vsel %vm633_vm0, %v673_v41, %v674_v42  ;;  %v676_v41 = vrot.slane %v2737_v60, 1  ;;  %v677_v42 = vrot.slane %v2260_v3, 1 }
  0x69   : > { %688 = vrot.lane.b32.xlu0 %v645_v47, %s2358_s9  ;;  %v571_v30 = vor.u32 %v570_v25, %v566_v24  ;;  %v583_v24 = vor.u32 %v582_v11, %v578_v10  ;;  %v487_v27 = vor.u32 %v486_v20, %v482_v19 }
  0x6b   : > { %v576_v35 = vsel %vm408_vm1, %v571_v30, %v575_v31 }
  0x6c   : > { %739 = vrot.lane.b32.xlu1 %v2555_v13, %s2357_s8 }
  0x6d   : > { %723 = vrot.lane.b32.xlu0 %v2558_v14, %s2357_s8 }
  0x70   : > { %741 = vrot.lane.b32.xlu1 %v2637_v49, %s2357_s8 }
  0x71   : > { %725 = vrot.lane.b32.xlu0 %v2642_v50, %s2357_s8 }
  0x74   : > { %786 = vrot.lane.b32.xlu1 %v552_v37, %s2360_s13  ;;  %v480_v37 = vsel %vm408_vm1, %v475_v32, %v479_v33 }
  0x75   : > { %770 = vrot.lane.b32.xlu0 %v456_v40, %s2360_s13 }
  0x78   : > { %788 = vrot.lane.b32.xlu1 %v564_v6, %s2360_s13 }
  0x79   : > { %772 = vrot.lane.b32.xlu0 %v468_v7, %s2360_s13 }
  0x7c   : > { %821 = vrot.lane.b32.xlu1 %v669_v45, %s2361_s22  ;;  %v650_v45 = vrot.slane %v2254_v21, 1 }
  0x7d   : > { %805 = vrot.lane.b32.xlu0 %v645_v47, %s2361_s22 }
  0x7e   : > { %v2722_v54 = vsel %vm633_vm0, %v649_v44, %v650_v45 }
  0x80   : > { %823 = vrot.lane.b32.xlu1 %v672_v15, %s2361_s22 }
  0x81   : > { %807 = vrot.lane.b32.xlu0 %v648_v17, %s2361_s22 }
  0x84   : > { %858 = vrot.lane.b32.xlu1 %v2637_v49, %s2362_s11 }
  0x85   : > { %842 = vrot.lane.b32.xlu0 %v2642_v50, %s2362_s11 }
  0x88   : > { %860 = vrot.lane.b32.xlu1 %v2671_v16, %s2362_s11 }
  0x89   : > { %844 = vrot.lane.b32.xlu0 %v2676_v18, %s2362_s11 }
  0x8c   : > { %905 = vrot.lane.b32.xlu1 %v564_v6, %s2363_s26 }
  0x8d   : > { %889 = vrot.lane.b32.xlu0 %v468_v7, %s2363_s26 }
  0x8e   : > { %v2695_v34 = vpop.permute.xlu1 %735 }
  0x8f   : > { %v2699_v36 = vpop.permute.xlu0 %719 }
  0x90   : > { %907 = vrot.lane.b32.xlu1 %v576_v35, %s2363_s26 }
  0x91   : > { %891 = vrot.lane.b32.xlu0 %v480_v37, %s2363_s26 }
  0x92   : > { %v2704_v38 = vpop.permute.xlu1 %698 }
  0x93   : > { %v2706_v40 = vpop.permute.xlu0 %682 }
  0x94   : > { %940 = vrot.lane.b32.xlu1 %v672_v15, %s2364_s5 }
  0x95   : > { %924 = vrot.lane.b32.xlu0 %v648_v17, %s2364_s5 }
  0x96   : > { %v2711_v43 = vpop.permute.xlu1 %700 }
  0x97   : > { %v2714_v47 = vpop.permute.xlu0 %684 }
  0x98   : > { %625 = vrot.lane.b32.xlu1 %v564_v6, %s2359_s10 }
  0x99   : > { %609 = vrot.lane.b32.xlu0 %v468_v7, %s2359_s10  ;;  %v2261_v7 = vld [vmem:[%s2452_s7 + $0x50] ss:$0 sps:$4 sm:$0x11]  }
  0x9a   : > { %v2719_v53 = vpop.permute.xlu1 %603  ;;  %v489_v21 = vshll.u32 %v2261_v7, 16  ;;  %v653_v44 = vrot.slane %v2261_v7, 1 }
  0x9b   : > { %v602_v55 = vpop.permute.xlu0 %601 }
  0x9c   : > { %942 = vrot.lane.b32.xlu1 %v675_v52, %s2364_s5  ;;  %v491_v28 = vrot.slane %v489_v21, 1  ;;  %v954_v10 = vsel %vm952_vm2, %v2469_v4, %v602_v55 }
  0x9d   : > { %926 = vrot.lane.b32.xlu0 %v2722_v54, %s2364_s5  ;;  %v987_v4 = vsel %vm985_vm3, %v954_v10, %v2706_v40  ;;  %v2828_v40 = vld [vmem:[%s2452_s7 + $0x5c] ss:$0 sps:$4 sm:$0x11]  }
  0x9e   : > { %v2727_v56 = vpop.permute.xlu1 %619  ;;  %v2780_v32 = vsel %vm408_vm1, %v487_v27, %v491_v28  ;;  %v590_v27 = vshrl.u32 %v2799_v8, 16 }
  0x9f   : > { %v618_v57 = vpop.permute.xlu0 %617 }
  0xa0   : > { %627 = vrot.lane.b32.xlu1 %v576_v35, %s2359_s10  ;;  %v970_v45 = vsel %vm952_vm2, %v2465_v2, %v618_v57 }
  0xa1   : > { %611 = vrot.lane.b32.xlu0 %v480_v37, %s2359_s10  ;;  %v1003_v57 = vsel %vm985_vm3, %v970_v45, %v2704_v38  ;;  %v592_v38 = vshll.u32 %v2799_v8, 16 }
  0xa2   : > { %v2731_v58 = vpop.permute.xlu1 %737  ;;  %v1036_v55 = vsel %vm1018_vm5, %v1003_v57, %v2695_v34  ;;  %v501_v57 = vshll.u32 %v2828_v40, 16 }
  0xa3   : > { %v2733_v59 = vpop.permute.xlu0 %721 }
  0xa4   : > { %706 = vrot.lane.b32.xlu1 %v672_v15, %s2358_s9  ;;  %v585_v15 = vshll.u32 %v2260_v3, 16  ;;  %v2796_v3 = vsel %vm633_vm0, %v676_v41, %v677_v42  ;;  %v594_v41 = vrot.slane %v592_v38, 1 }
  0xa5   : > { %690 = vrot.lane.b32.xlu0 %v648_v17, %s2358_s9 }
  0xa6   : > { %v2740_v61 = vpop.permute.xlu1 %782  ;;  %v587_v25 = vrot.slane %v585_v15, 1 }
  0xa7   : > { %v2745_v63 = vpop.permute.xlu0 %766  ;;  %v1069_v20 = vsel %vm1051_vm4, %v1036_v55, %v2740_v61 }
  0xa8   : > { %708 = vrot.lane.b32.xlu1 %v675_v52, %s2358_s9  ;;  %v2776_v30 = vsel %vm408_vm1, %v583_v24, %v587_v25  ;;  %v1020_v24 = vsel %vm1018_vm5, %v987_v4, %v2699_v36  ;;  %v972_v36 = vsel %vm952_vm2, %v2455_v0, %v2727_v56  ;;  %v956_v0 = vsel %vm952_vm2, %v2458_v1, %v2719_v53 }
  0xa9   : > { %692 = vrot.lane.b32.xlu0 %v2722_v54, %s2358_s9  ;;  %v1053_v61 = vsel %vm1051_vm4, %v1020_v24, %v2745_v63  ;;  %v595_v4 = vor.u32 %v594_v41, %v590_v27  ;;  %v989_v53 = vsel %vm985_vm3, %v956_v0, %v2714_v47 }
  0xaa   : > { %v2752_v6 = vpop.permute.xlu1 %784 }
  0xab   : > { %v2756_v9 = vpop.permute.xlu0 %768 }
  0xac   : > { %743 = vrot.lane.b32.xlu1 %v2671_v16, %s2357_s8 }
  0xad   : > { %727 = vrot.lane.b32.xlu0 %v2676_v18, %s2357_s8 }
  0xae   : > { %v818_v17 = vpop.permute.xlu1 %817 }
  0xaf   : > { %v2764_v22 = vpop.permute.xlu0 %801  ;;  %v1102_v25 = vsel %vm1084_vm6, %v1069_v20, %v818_v17  ;;  %v503_v20 = vrot.slane %v501_v57, 1  ;;  %v2271_v57 = vld [vmem:[%s2452_s7 + $0xc0] sm:$0xff]  }
  0xb0   : > { %745 = vrot.lane.b32.xlu1 %v2737_v60, %s2357_s8  ;;  %v1086_v17 = vsel %vm1084_vm6, %v1053_v61, %v2764_v22 }
  0xb1   : > { %729 = vrot.lane.b32.xlu0 %v2743_v62, %s2357_s8 }
  0xb2   : > { %v2770_v26 = vpop.permute.xlu1 %819 }
  0xb3   : > { %v2772_v29 = vpop.permute.xlu0 %803 }
  0xb4   : > { %790 = vrot.lane.b32.xlu1 %v576_v35, %s2360_s13 }
  0xb5   : > { %774 = vrot.lane.b32.xlu0 %v480_v37, %s2360_s13  ;;  %v652_v37 = vrot.slane %v2743_v62, 1 }
  0xb6   : > { %v855_v31 = vpop.permute.xlu1 %854 }
  0xb7   : > { %v839_v33 = vpop.permute.xlu0 %838  ;;  %v2808_v11 = vsel %vm633_vm0, %v652_v37, %v653_v44  ;;  %v1135_v28 = vsel %vm1117_vm7, %v1102_v25, %v855_v31 }
  0xb8   : > { %792 = vrot.lane.b32.xlu1 %v2776_v30, %s2360_s13  ;;  %v1119_v31 = vsel %vm1117_vm7, %v1086_v17, %v839_v33  ;;  %v1005_v33 = vsel %vm985_vm3, %v972_v36, %v2711_v43 }
  0xb9   : > { %776 = vrot.lane.b32.xlu0 %v2780_v32, %s2360_s13  ;;  %v1038_v55 = vsel %vm1018_vm5, %v1005_v33, %v2731_v58  ;;  %v757_v33 = vshll.u32 %v2271_v57, 16 }
  0xba   : > { %v2787_v35 = vpop.permute.xlu1 %856  ;;  %v1071_v43 = vsel %vm1051_vm4, %v1038_v55, %v2752_v6 }
  0xbb   : > { %v2792_v5 = vpop.permute.xlu0 %840  ;;  %v1104_v58 = vsel %vm1084_vm6, %v1071_v43, %v2770_v26 }
  0xbc   : > { %825 = vrot.lane.b32.xlu1 %v675_v52, %s2361_s22  ;;  %v2811_v52 = vld [vmem:[%s2452_s7 + $0x54] sm:$0xff]   ;;  %v1137_v47 = vsel %vm1117_vm7, %v1104_v58, %v2787_v35 }
  0xbd   : > { %809 = vrot.lane.b32.xlu0 %v2722_v54, %s2361_s22  ;;  %v2818_v54 = vld [vmem:[%s2452_s7 + $0xbc] ss:$0 sps:$4 sm:$0x11]   ;;  %v496_v21 = vshll.u32 %v2811_v52, 16  ;;  %v494_v63 = vshrl.u32 %v2811_v52, 16  ;;  %v655_v17 = vrot.slane %v2811_v52, 1 }
  0xbe   : > { %v902_v7 = vpop.permute.xlu1 %901  ;;  %v597_v42 = vshll.u32 %v2818_v54, 16 }
  0xbf   : > { %v886_v15 = vpop.permute.xlu0 %885  ;;  %v1168_v37 = vsel %vm1150_vm8, %v1135_v28, %v902_v7  ;;  %v498_v10 = vrot.slane %v496_v21, 1  ;;  %v1022_v21 = vsel %vm1018_vm5, %v989_v53, %v2733_v59 }
  0xc0   : > { %827 = vrot.lane.b32.xlu1 %v2796_v3, %s2361_s22  ;;  %v1152_v56 = vsel %vm1150_vm8, %v1119_v31, %v886_v15  ;;  %v599_v38 = vrot.slane %v597_v42, 1  ;;  %v1055_v25 = vsel %vm1051_vm4, %v1022_v21, %v2756_v9  ;;  %v680_v42 = vrot.slane %v2818_v54, 1 }
  0xc1   : > { %811 = vrot.lane.b32.xlu0 %v2808_v11, %s2361_s22  ;;  %v499_v15 = vor.u32 %v498_v10, %v494_v63  ;;  %v1088_v27 = vsel %vm1084_vm6, %v1055_v25, %v2772_v29 }
  0xc2   : > { %v904_v19 = vpop.permute.xlu1 %903  ;;  %v600_v6 = vsel %vm408_vm1, %v595_v4, %v599_v38  ;;  %v1121_v61 = vsel %vm1117_vm7, %v1088_v27, %v2792_v5  ;;  %v759_v38 = vrot.slane %v757_v33, 1  ;;  %v798_v27 = vrot.slane %v2271_v57, 1 }
  0xc3   : > { %v888_v34 = vpop.permute.xlu0 %887  ;;  %v1170_v59 = vsel %vm1150_vm8, %v1137_v47, %v904_v19  ;;  %v504_v9 = vsel %vm408_vm1, %v499_v15, %v503_v20 }
  0xc4   : > { %862 = vrot.lane.b32.xlu1 %v2737_v60, %s2362_s11  ;;  %v1154_v35 = vsel %vm1150_vm8, %v1121_v61, %v888_v34  ;;  %v679_v34 = vrot.slane %v2799_v8, 1  ;;  %v2973_v61 = vld [vmem:[%s2452_s7 + $0xcc] sm:$0xff]  }
  0xc5   : > { %846 = vrot.lane.b32.xlu0 %v2743_v62, %s2362_s11 }
  0xc6   : > { %v937_v44 = vpop.permute.xlu1 %936  ;;  %v681_v63 = vsel %vm633_vm0, %v679_v34, %v680_v42  ;;  %v876_v34 = vshll.u32 %v2973_v61, 16 }
  0xc7   : > { %v1201_v45 = vsel %vm1183_vm9, %v1168_v37, %v937_v44  ;;  %v921_v22 = vpop.permute.xlu0 %920  ;;  %v656_v37 = vrot.slane %v2828_v40, 1 }
  0xc8   : > { %864 = vrot.lane.b32.xlu1 %v2799_v8, %s2362_s11  ;;  %2134 = vmatprep.mubr.msk.bf16.mxu1 %vm1216_vm10, %v1201_v45  ;;  %v1185_v7 = vsel %vm1183_vm9, %v1152_v56, %v921_v22  ;;  %v2272_v22 = vld [vmem:[%s2452_s7 + $0xc8] ss:$0 sps:$4 sm:$0x11]  }
  0xc9   : > { %848 = vrot.lane.b32.xlu0 %v2811_v52, %s2362_s11  ;;  %2118 = vmatprep.mubr.msk.bf16.mxu0 %vm1216_vm10, %v1185_v7  ;;  %v657_v31 = vsel %vm633_vm0, %v655_v17, %v656_v37  ;;  %v762_v55 = vshll.u32 %v2272_v22, 16 }
  0xca   : > { %v2868_v1 = vpop.permute.xlu1 %621 }
  0xcb   : > { %v2878_v24 = vpop.permute.xlu0 %605  ;;  %v764_v15 = vrot.slane %v762_v55, 1 }
  0xcc   : > { %909 = vrot.lane.b32.xlu1 %v2776_v30, %s2363_s26  ;;  %v958_v42 = vsel %vm952_vm2, %v2509_v46, %v2878_v24  ;;  %v874_v46 = vshrl.u32 %v2973_v61, 16 }
  0xcd   : > { %893 = vrot.lane.b32.xlu0 %v2780_v32, %s2363_s26 }
  0xce   : > { %v939_v26 = vpop.permute.xlu1 %938 }
  0xcf   : > { %v1203_v28 = vsel %vm1183_vm9, %v1170_v59, %v939_v26  ;;  %v923_v41 = vpop.permute.xlu0 %922 }
  0xd0   : > { %911 = vrot.lane.b32.xlu1 %v600_v6, %s2363_s26  ;;  %2135 = vmatmul.mubr.msk.bf16.vlgmr.msra.gmra.mrb[0].mxu1 %vm1216_vm10, %v1203_v28  ;;  %v1187_v29 = vsel %vm1183_vm9, %v1154_v35, %v923_v41 }
  0xd1   : > { %895 = vrot.lane.b32.xlu0 %v504_v9, %s2363_s26  ;;  %2119 = vmatmul.mubr.msk.bf16.vlgmr.msra.gmra.mrb[0].mxu0 %vm1216_vm10, %v1187_v29  ;;  %v2983_v29 = vld [vmem:[%s2452_s7 + $0xd4] ss:$0 sps:$4 sm:$0x11]  }
  0xd2   : > { %v2902_v19 = vpop.permute.xlu1 %623  ;;  %v881_v33 = vshll.u32 %v2983_v29, 16 }
  0xd3   : > { %v2904_v5 = vpop.permute.xlu0 %607 }
  0xd4   : > { %944 = vrot.lane.b32.xlu1 %v2796_v3, %s2364_s5 }
  0xd5   : > { %928 = vrot.lane.b32.xlu0 %v2808_v11, %s2364_s5 }
  0xd6   : > { %v703_v36 = vpop.permute.xlu1 %702 }
  0xd7   : > { %v2914_v44 = vpop.permute.xlu0 %686 }
  0xd8   : > { %629 = vrot.lane.b32.xlu1 %v2776_v30, %s2359_s10 }
  0xd9   : > { %613 = vrot.lane.b32.xlu0 %v2780_v32, %s2359_s10 }
  0xda   : > { %v2921_v54 = vpop.permute.xlu1 %704 }
  0xdb   : > { %v2924_v45 = vpop.permute.xlu0 %688 }
  0xdc   : > { %946 = vrot.lane.b32.xlu1 %v681_v63, %s2364_s5 }
  0xdd   : > { %930 = vrot.lane.b32.xlu0 %v657_v31, %s2364_s5 }
  0xde   : > { %v740_v40 = vpop.permute.xlu1 %739 }
  0xdf   : > { %v724_v10 = vpop.permute.xlu0 %723 }
  0xe0   : > { %631 = vrot.lane.b32.xlu1 %v600_v6, %s2359_s10 }
  0xe1   : > { %615 = vrot.lane.b32.xlu0 %v504_v9, %s2359_s10 }
  0xe2   : > { %v2930_v30 = vpop.permute.xlu1 %741 }
  0xe3   : > { %v2932_v32 = vpop.permute.xlu0 %725 }
  0xe4   : > { %710 = vrot.lane.b32.xlu1 %v2796_v3, %s2358_s9  ;;  %v755_v3 = vshrl.u32 %v2271_v57, 16 }
  0xe5   : > { %694 = vrot.lane.b32.xlu0 %v2808_v11, %s2358_s9 }
  0xe6   : > { %v787_v0 = vpop.permute.xlu1 %786  ;;  %v760_v43 = vor.u32 %v759_v38, %v755_v3  ;;  %v2275_v3 = vld [vmem:[%s2452_s7 + $0x60] sm:$0xff]  }
  0xe7   : > { %v771_v56 = vpop.permute.xlu0 %770 }
  0xe8   : > { %712 = vrot.lane.b32.xlu1 %v681_v63, %s2358_s9  ;;  %v2959_v58 = vsel %vm408_vm1, %v760_v43, %v764_v15 }
  0xe9   : > { %696 = vrot.lane.b32.xlu0 %v657_v31, %s2358_s9 }
  0xea   : > { %v2942_v7 = vpop.permute.xlu1 %788 }
  0xeb   : > { %v2944_v4 = vpop.permute.xlu0 %772 }
  0xec   : > { %747 = vrot.lane.b32.xlu1 %v2799_v8, %s2357_s8 }
  0xed   : > { %731 = vrot.lane.b32.xlu0 %v2811_v52, %s2357_s8 }
  0xee   : > { %v822_v11 = vpop.permute.xlu1 %821 }
  0xef   : > { %v806_v53 = vpop.permute.xlu0 %805 }
  0xf0   : > { %749 = vrot.lane.b32.xlu1 %v2271_v57, %s2357_s8 }
  0xf1   : > { %733 = vrot.lane.b32.xlu0 %v2465_v2, %s2357_s8  ;;  %v799_v2 = vrot.slane %v2272_v22, 1  ;;  %v878_v22 = vrot.slane %v876_v34, 1  ;;  %v918_v34 = vrot.slane %v2983_v29, 1 }
  0xf2   : > { %v2953_v20 = vpop.permute.xlu1 %823 }
  0xf3   : > { %v2955_v21 = vpop.permute.xlu0 %807  ;;  %v879_v15 = vor.u32 %v878_v22, %v874_v46 }
  0xf4   : > { %794 = vrot.lane.b32.xlu1 %v600_v6, %s2360_s13  ;;  %v2970_v6 = vsel %vm633_vm0, %v798_v27, %v799_v2 }
  0xf5   : > { %778 = vrot.lane.b32.xlu0 %v504_v9, %s2360_s13  ;;  %v974_v9 = vsel %vm952_vm2, %v2502_v39, %v2868_v1  ;;  %v991_v1 = vsel %vm985_vm3, %v958_v42, %v2914_v44 }
  0xf6   : > { %v859_v25 = vpop.permute.xlu1 %858  ;;  %v1007_v41 = vsel %vm985_vm3, %v974_v9, %v703_v36  ;;  %v1024_v37 = vsel %vm1018_vm5, %v991_v1, %v724_v10 }
  0xf7   : > { %v843_v47 = vpop.permute.xlu0 %842  ;;  %v1040_v17 = vsel %vm1018_vm5, %v1007_v41, %v740_v40  ;;  %v1057_v24 = vsel %vm1051_vm4, %v1024_v37, %v771_v56  ;;  %v976_v56 = vsel %vm952_vm2, %v2555_v13, %v2902_v19  ;;  %v2276_v19 = vld [vmem:[%s2452_s7 + $0x6c] sm:$0xff]  }
  0xf8   : > { %796 = vrot.lane.b32.xlu1 %v2959_v58, %s2360_s13  ;;  %v1073_v36 = vsel %vm1051_vm4, %v1040_v17, %v787_v0  ;;  %v1090_v44 = vsel %vm1084_vm6, %v1057_v24, %v806_v53  ;;  %v1009_v53 = vsel %vm985_vm3, %v976_v56, %v2921_v54 }
  0xf9   : > { %780 = vrot.lane.b32.xlu0 %v2519_v51, %s2360_s13  ;;  %v1042_v13 = vsel %vm1018_vm5, %v1009_v53, %v2930_v30 }
  0xfa   : > { %v861_v59 = vpop.permute.xlu1 %860  ;;  %v1075_v2 = vsel %vm1051_vm4, %v1042_v13, %v2942_v7 }
  0xfb   : > { %v2966_v26 = vpop.permute.xlu0 %844 }
  0xfc   : > { %829 = vrot.lane.b32.xlu1 %v681_v63, %s2361_s22  ;;  %v1106_v63 = vsel %vm1084_vm6, %v1073_v36, %v822_v11 }
  0xfd   : > { %813 = vrot.lane.b32.xlu0 %v657_v31, %s2361_s22  ;;  %v1139_v40 = vsel %vm1117_vm7, %v1106_v63, %v859_v25  ;;  %v883_v25 = vrot.slane %v881_v33, 1 }
  0xfe   : > { %v906_v28 = vpop.permute.xlu1 %905 }
  0xff   : > { %v890_v35 = vpop.permute.xlu0 %889  ;;  %v1172_v0 = vsel %vm1150_vm8, %v1139_v40, %v906_v28 }
 0x100   : > { %831 = vrot.lane.b32.xlu1 %v2970_v6, %s2361_s22 }
 0x101   : > { %815 = vrot.lane.b32.xlu0 %v2478_v12, %s2361_s22  ;;  %s212_s22 = sand.u32 1, %s2339_s16  }
 0x102   : > { %v908_v39 = vpop.permute.xlu1 %907  ;;  %s1849_s6 = sshll.u32 %s212_s22, 7  ;;  %s3251_s18 = scalar_lea.sflag [#allocation3], %s212_s22 }
 0x103   : > { %v892_v31 = vpop.permute.xlu0 %891 }
 0x104   : > { %866 = vrot.lane.b32.xlu1 %v2271_v57, %s2362_s11  ;;  %v1123_v57 = vsel %vm1117_vm7, %v1090_v44, %v843_v47  ;;  %v960_v47 = vsel %vm952_vm2, %v2558_v14, %v2904_v5  ;;  %v1108_v14 = vsel %vm1084_vm6, %v1075_v2, %v2953_v20 }
 0x105   : > { %850 = vrot.lane.b32.xlu0 %v2275_v3, %s2362_s11  ;;  %v1156_v55 = vsel %vm1150_vm8, %v1123_v57, %v890_v35  ;;  %v993_v54 = vsel %vm985_vm3, %v960_v47, %v2924_v45  ;;  %v1141_v9 = vsel %vm1117_vm7, %v1108_v14, %v861_v59  ;;  %v884_v45 = vsel %vm408_vm1, %v879_v15, %v883_v25 }
 0x106   : > { %v941_v10 = vpop.permute.xlu1 %940  ;;  %v1026_v28 = vsel %vm1018_vm5, %v993_v54, %v2932_v32  ;;  %v1174_v35 = vsel %vm1150_vm8, %v1141_v9, %v908_v39  ;;  %v917_v59 = vrot.slane %v2973_v61, 1 }
 0x107   : > { %v1205_v38 = vsel %vm1183_vm9, %v1172_v0, %v941_v10  ;;  %v925_v11 = vpop.permute.xlu0 %924  ;;  %v1059_v30 = vsel %vm1051_vm4, %v1026_v28, %v2944_v4 }
 0x108   : > { %868 = vrot.lane.b32.xlu1 %v2973_v61, %s2362_s11  ;;  %2138 = vmatprep.mubr.msk.bf16.mxu1 %vm1216_vm10, %v1205_v38  ;;  %v1189_v43 = vsel %vm1183_vm9, %v1156_v55, %v925_v11  ;;  %v1092_v7 = vsel %vm1084_vm6, %v1059_v30, %v2955_v21  ;;  %v919_v42 = vsel %vm633_vm0, %v917_v59, %v918_v34 }
 0x109   : > { %852 = vrot.lane.b32.xlu0 %v2276_v19, %s2362_s11  ;;  %2122 = vmatprep.mubr.msk.bf16.mxu0 %vm1216_vm10, %v1189_v43  ;;  %v1125_v20 = vsel %vm1117_vm7, %v1092_v7, %v2966_v26  ;;  %s3174_s11 = scalar_lea.vmem [#allocation2], %s1849_s6 }
 0x10a   : > { %v626_v27 = vpop.permute.xlu1 %625  ;;  %v1158_v4 = vsel %vm1150_vm8, %v1125_v20, %v892_v31  ;;  %s1762_s14 = sshll.u32 %s3174_s11, 4  ;;  %s3245_s14 = int_to_ptr.vmem [resolvable:$true] %s1762_s14 }
 0x10b   : > { %v610_v5 = vpop.permute.xlu0 %609  ;;  %s2277_s29 = scalar_lea.vmem %s3245_s14, 2048 }
 0x10c   : > { %913 = vrot.lane.b32.xlu1 %v2959_v58, %s2363_s26  ;;  %v962_v56 = vsel %vm952_vm2, %v2642_v50, %v610_v5  ;;  %p2278_p12 = scmp.ne.s32.totalorder %s3245_s14, %s2277_s29 }
 0x10d   : > { %897 = vrot.lane.b32.xlu0 %v2519_v51, %s2363_s26 }
 0x10e   : > { %v943_v32 = vpop.permute.xlu1 %942  ;;  %p2279_p13 = pnand %p2278_p12, %p2432_p4 }
 0x10f   : > { %v1207_v58 = vsel %vm1183_vm9, %v1174_v35, %v943_v32  ;;  %v927_v41 = vpop.permute.xlu0 %926 }
 0x110   : > { %915 = vrot.lane.b32.xlu1 %v884_v45, %s2363_s26  ;;  %2139 = vmatmul.mubr.msk.bf16.gmra.mrb[4].mxu1 %vm1216_vm10, %v1207_v58  ;;  %v1191_v21 = vsel %vm1183_vm9, %v1158_v4, %v927_v41  ;;  %p2280_p0 = pneg %p2279_p13 }
 0x111   : > { %899 = vrot.lane.b32.xlu0 %v2514_v48, %s2363_s26  ;;  %2123 = vmatmul.mubr.msk.bf16.gmra.mrb[4].mxu0 %vm1216_vm10, %v1191_v21  ;;  %s3242_s26 = scalar_lea.hbm %s3302_s4, %s1982_s12 }
 0x112   : > { %v628_v51 = vpop.permute.xlu1 %627 }
 0x113   : > { %v612_v26 = vpop.permute.xlu0 %611  ;;  %v980_v28 = vsel %vm952_vm2, %v2671_v16, %v628_v51 }
 0x114   : > { %948 = vrot.lane.b32.xlu1 %v2970_v6, %s2364_s5  ;;  %v964_v45 = vsel %vm952_vm2, %v2676_v18, %v612_v26 }
 0x115   : > { %932 = vrot.lane.b32.xlu0 %v2478_v12, %s2364_s5 }
 0x116   : > { %v707_v17 = vpop.permute.xlu1 %706 }
 0x117   : > { %v691_v39 = vpop.permute.xlu0 %690 }
 0x118   : > { %950 = vrot.lane.b32.xlu1 %v919_v42, %s2364_s5  ;;  %v995_v53 = vsel %vm985_vm3, %v962_v56, %v691_v39 }
 0x119   : > { %934 = vrot.lane.b32.xlu0 %v2490_v23, %s2364_s5  ;;  %v978_v23 = vsel %vm952_vm2, %v2637_v49, %v626_v27  ;;  %s2281_s5 = sshll.u32 %s2365_s30, 4  ;;  %s2282_s5 = int_to_ptr.vmem [resolvable:$false] %s2281_s5 }
 0x11a   : > { %v709_v48 = vpop.permute.xlu1 %708  ;;  %v1011_v38 = vsel %vm985_vm3, %v978_v23, %v707_v17  ;;  %s2283_s7 = scalar_lea.vmem %s2282_s5, 4096  ;;  %p2284_p1 = scmp.lt.s32.totalorder %s3245_s14, %s2282_s5 }
 0x11b   : > { %v693_v61 = vpop.permute.xlu0 %692  ;;  %v1013_v30 = vsel %vm985_vm3, %v980_v28, %v709_v48  ;;  %p2285_p2 = scmp.lt.s32.totalorder %s2283_s7, %s2277_s29 }
 0x11c   : > { %v997_v32 = vsel %vm985_vm3, %v964_v45, %v693_v61 }
 0x11d   : > { %p2286_p3 = por %p2285_p2, %p2284_p1 }
 0x11e   : > { %v744_v29 = vpop.permute.xlu1 %743 }
 0x11f   : > { %v728_v1 = vpop.permute.xlu0 %727  ;;  %v1044_v55 = vsel %vm1018_vm5, %v1011_v38, %v744_v29  ;;  %p2287_p5 = pnand %p2286_p3, %p2280_p0 }
 0x120   : > { %v1028_v15 = vsel %vm1018_vm5, %v995_v53, %v728_v1 }
 0x122   : > { %v746_v36 = vpop.permute.xlu1 %745 }
 0x123   : > { %v730_v37 = vpop.permute.xlu0 %729  ;;  %v1046_v7 = vsel %vm1018_vm5, %v1013_v30, %v746_v36 }
 0x124   : > { %v1030_v20 = vsel %vm1018_vm5, %v997_v32, %v730_v37 }
 0x126   : > { %v791_v63 = vpop.permute.xlu1 %790 }
 0x127   : > { %v775_v6 = vpop.permute.xlu0 %774  ;;  %v1077_v43 = vsel %vm1051_vm4, %v1044_v55, %v791_v63 }
 0x128   : > { %v1061_v49 = vsel %vm1051_vm4, %v1028_v15, %v775_v6 }
 0x12a   : > { %v793_v31 = vpop.permute.xlu1 %792 }
 0x12b   : > { %v777_v46 = vpop.permute.xlu0 %776  ;;  %v1079_v16 = vsel %vm1051_vm4, %v1046_v7, %v793_v31 }
 0x12c   : > { %v1063_v41 = vsel %vm1051_vm4, %v1030_v20, %v777_v46 }
 0x12e   : > { %v826_v24 = vpop.permute.xlu1 %825 }
 0x12f   : > { %v810_v40 = vpop.permute.xlu0 %809  ;;  %v1110_v25 = vsel %vm1084_vm6, %v1077_v43, %v826_v24 }
 0x130   : > { %v1094_v19 = vsel %vm1084_vm6, %v1061_v49, %v810_v40 }
 0x132   : > { %v828_v12 = vpop.permute.xlu1 %827 }
 0x133   : > { %v812_v22 = vpop.permute.xlu0 %811  ;;  %v1112_v58 = vsel %vm1084_vm6, %v1079_v16, %v828_v12 }
 0x134   : > { %v1096_v18 = vsel %vm1084_vm6, %v1063_v41, %v812_v22 }
 0x136   : > { %v863_v33 = vpop.permute.xlu1 %862 }
 0x137   : > { %v847_v44 = vpop.permute.xlu0 %846  ;;  %v1143_v13 = vsel %vm1117_vm7, %v1110_v25, %v863_v33 }
 0x138   : > { %v1127_v54 = vsel %vm1117_vm7, %v1094_v19, %v847_v44 }
 0x13a   : > { %v865_v0 = vpop.permute.xlu1 %864 }
 0x13b   : > { %v849_v3 = vpop.permute.xlu0 %848  ;;  %v1145_v21 = vsel %vm1117_vm7, %v1112_v58, %v865_v0 }
 0x13c   : > { %v1129_v51 = vsel %vm1117_vm7, %v1096_v18, %v849_v3 }
 0x13e   : > { %v910_v10 = vpop.permute.xlu1 %909 }
 0x13f   : > { %v894_v57 = vpop.permute.xlu0 %893  ;;  %v1176_v50 = vsel %vm1150_vm8, %v1143_v13, %v910_v10 }
 0x140   : > { %v1160_v14 = vsel %vm1150_vm8, %v1127_v54, %v894_v57 }
 0x142   : > { %v912_v11 = vpop.permute.xlu1 %911 }
 0x143   : > { %v896_v47 = vpop.permute.xlu0 %895  ;;  %v1178_v59 = vsel %vm1150_vm8, %v1145_v21, %v912_v11 }
 0x144   : > { %v1162_v42 = vsel %vm1150_vm8, %v1129_v51, %v896_v47 }
 0x146   : > { %v945_v27 = vpop.permute.xlu1 %944 }
 0x147   : > { %v1209_v2 = vsel %vm1183_vm9, %v1176_v50, %v945_v27  ;;  %v929_v5 = vpop.permute.xlu0 %928 }
 0x148   : > { %2142 = vmatprep.mubr.msk.bf16.mxu1 %vm1216_vm10, %v1209_v2  ;;  %v1193_v9 = vsel %vm1183_vm9, %v1160_v14, %v929_v5 }
 0x149   : > { %2126 = vmatprep.mubr.msk.bf16.mxu0 %vm1216_vm10, %v1193_v9 }
 0x14a   : > { %v630_v35 = vpop.permute.xlu1 %629 }
 0x14b   : > { %v614_v4 = vpop.permute.xlu0 %613  ;;  %v982_v55 = vsel %vm952_vm2, %v2737_v60, %v630_v35 }
 0x14c   : > { %v966_v43 = vsel %vm952_vm2, %v2743_v62, %v614_v4 }
 0x14e   : > { %v947_v34 = vpop.permute.xlu1 %946 }
 0x14f   : > { %v1211_v26 = vsel %vm1183_vm9, %v1178_v59, %v947_v34  ;;  %v931_v17 = vpop.permute.xlu0 %930 }
 0x150   : > { %2143 = vmatmul.mubr.msk.bf16.gmra.mrb[8].mxu1 %vm1216_vm10, %v1211_v26  ;;  %v1195_v39 = vsel %vm1183_vm9, %v1162_v42, %v931_v17  ;;  %v3148_v17 = vld [vmem:[%s3300_s2] ss:$0 sm:$0xff] }
 0x151   : > { %2127 = vmatmul.mubr.msk.bf16.gmra.mrb[8].mxu0 %vm1216_vm10, %v1195_v39  ;;  %v3153_v39 = vld [vmem:[%s3301_s3] ss:$0 sm:$0xff] }
 0x152   : > { %v632_v48 = vpop.permute.xlu1 %631 }
 0x153   : > { %v616_v61 = vpop.permute.xlu0 %615  ;;  %v984_v13 = vsel %vm952_vm2, %v2799_v8, %v632_v48 }
 0x154   : > { %v968_v2 = vsel %vm952_vm2, %v2811_v52, %v616_v61 }
 0x156   : > { %v711_v29 = vpop.permute.xlu1 %710 }
 0x157   : > { %v695_v1 = vpop.permute.xlu0 %694  ;;  %v1015_v53 = vsel %vm985_vm3, %v982_v55, %v711_v29 }
 0x158   : > { %v999_v47 = vsel %vm985_vm3, %v966_v43, %v695_v1 }
 0x15a   : > { %v713_v36 = vpop.permute.xlu1 %712 }
 0x15b   : > { %v697_v37 = vpop.permute.xlu0 %696  ;;  %v1017_v27 = vsel %vm985_vm3, %v984_v13, %v713_v36 }
 0x15c   : > { %v1001_v30 = vsel %vm985_vm3, %v968_v2, %v697_v37 }
 0x15e   : > { %v748_v63 = vpop.permute.xlu1 %747 }
 0x15f   : > { %v732_v6 = vpop.permute.xlu0 %731  ;;  %v1048_v15 = vsel %vm1018_vm5, %v1015_v53, %v748_v63 }
 0x160   : > { %v1032_v19 = vsel %vm1018_vm5, %v999_v47, %v732_v6 }
 0x162   : > { %v750_v31 = vpop.permute.xlu1 %749 }
 0x163   : > { %v734_v46 = vpop.permute.xlu0 %733  ;;  %v1050_v28 = vsel %vm1018_vm5, %v1017_v27, %v750_v31 }
 0x164   : > { %v1034_v35 = vsel %vm1018_vm5, %v1001_v30, %v734_v46 }
 0x166   : > { %v795_v24 = vpop.permute.xlu1 %794 }
 0x167   : > { %v779_v40 = vpop.permute.xlu0 %778  ;;  %v1081_v49 = vsel %vm1051_vm4, %v1048_v15, %v795_v24 }
 0x168   : > { %v1065_v54 = vsel %vm1051_vm4, %v1032_v19, %v779_v40 }
 0x16a   : > { %v797_v12 = vpop.permute.xlu1 %796 }
 0x16b   : > { %v781_v22 = vpop.permute.xlu0 %780  ;;  %v1083_v9 = vsel %vm1051_vm4, %v1050_v28, %v797_v12 }
 0x16c   : > { %v1067_v20 = vsel %vm1051_vm4, %v1034_v35, %v781_v22 }
 0x16e   : > { %v830_v33 = vpop.permute.xlu1 %829 }
 0x16f   : > { %v814_v44 = vpop.permute.xlu0 %813  ;;  %v1114_v60 = vsel %vm1084_vm6, %v1081_v49, %v830_v33 }
 0x170   : > { %v1098_v14 = vsel %vm1084_vm6, %v1065_v54, %v814_v44 }
 0x172   : > { %v832_v0 = vpop.permute.xlu1 %831 }
 0x173   : > { %v816_v3 = vpop.permute.xlu0 %815  ;;  %v1116_v32 = vsel %vm1084_vm6, %v1083_v9, %v832_v0 }
 0x174   : > { %v1100_v41 = vsel %vm1084_vm6, %v1067_v20, %v816_v3 }
 0x176   : > { %v867_v10 = vpop.permute.xlu1 %866 }
 0x177   : > { %v851_v23 = vpop.permute.xlu0 %850  ;;  %v1147_v62 = vsel %vm1117_vm7, %v1114_v60, %v867_v10 }
 0x178   : > { %v1131_v45 = vsel %vm1117_vm7, %v1098_v14, %v851_v23 }
 0x17a   : > { %v869_v57 = vpop.permute.xlu1 %868 }
 0x17b   : > { %v853_v38 = vpop.permute.xlu0 %852  ;;  %v1149_v58 = vsel %vm1117_vm7, %v1116_v32, %v869_v57 }
 0x17c   : > { %v1133_v59 = vsel %vm1117_vm7, %v1100_v41, %v853_v38 }
 0x17e   : > { %v914_v56 = vpop.permute.xlu1 %913 }
 0x17f   : > { %v898_v11 = vpop.permute.xlu0 %897  ;;  %v1180_v8 = vsel %vm1150_vm8, %v1147_v62, %v914_v56 }
 0x180   : > { %v1164_v52 = vsel %vm1150_vm8, %v1131_v45, %v898_v11 }
 0x182   : > { %v916_v25 = vpop.permute.xlu1 %915 }
 0x183   : > { %v900_v50 = vpop.permute.xlu0 %899  ;;  %v1182_v21 = vsel %vm1150_vm8, %v1149_v58, %v916_v25 }
 0x184   : > { %v1166_v51 = vsel %vm1150_vm8, %v1133_v59, %v900_v50 }
 0x186   : > { %v949_v5 = vpop.permute.xlu1 %948 }
 0x187   : > { %v1213_v7 = vsel %vm1183_vm9, %v1180_v8, %v949_v5  ;;  %v933_v16 = vpop.permute.xlu0 %932 }
 0x188   : > { %2146 = vmatprep.mubr.msk.bf16.mxu1 %vm1216_vm10, %v1213_v7  ;;  %v1197_v4 = vsel %vm1183_vm9, %v1164_v52, %v933_v16 }
 0x189   : > { %2130 = vmatprep.mubr.msk.bf16.mxu0 %vm1216_vm10, %v1197_v4 }
 0x18a   : > { %v951_v18 = vpop.permute.xlu1 %950 }
 0x18b   : > { %v1215_v34 = vsel %vm1183_vm9, %v1182_v21, %v951_v18  ;;  %v935_v26 = vpop.permute.xlu0 %934 }
 0x18c   : > { %2147 = vmatmul.mubr.msk.bf16.gmra.mrb[12].mxu1 %vm1216_vm10, %v1215_v34  ;;  %v1199_v42 = vsel %vm1183_vm9, %v1166_v51, %v935_v26 }
 0x18d   : > { %2131 = vmatmul.mubr.msk.bf16.gmra.mrb[12].mxu0 %vm1216_vm10, %v1199_v42 }
 0x1a3   : > { %v2136_v48 = vpop.f32.mrb[0].mxu1 }
 0x1a4   : > { %v1500_v61 = vmul.f32 %v2136_v48, %v3148_v17  ;;  %v1412_v29 = vpop.f32.mrb[1].mxu1  ;;  %v2120_v1 = vpop.f32.mrb[0].mxu0 }
 0x1a5   : > { %v1498_v36 = vmul.f32 %v3148_v17, %v1412_v29  ;;  %v2137_v37 = vpop.f32.mrb[2].mxu1  ;;  %v1484_v63 = vmul.f32 %v2120_v1, %v3148_v17  ;;  %v1348_v31 = vpop.f32.mrb[1].mxu0 }
 0x1a6   : > { %v1539_v6 = vadd.f32 %v3153_v39, %v1500_v61  ;;  %v1501_v46 = vmul.f32 %v2137_v37, %v3148_v17  ;;  %v1415_v24 = vpop.f32.mrb[3].mxu1  ;;  %v1482_v40 = vmul.f32 %v3148_v17, %v1348_v31  ;;  %v2121_v22 = vpop.f32.mrb[2].mxu0 }
 0x1a7   : > { %v1537_v12 = vadd.f32 %v3153_v39, %v1498_v36  ;;  %v1499_v33 = vmul.f32 %v3148_v17, %v1415_v24  ;;  %v1523_v44 = vadd.f32 %v3153_v39, %v1484_v63  ;;  %v1485_v0 = vmul.f32 %v2121_v22, %v3148_v17  ;;  %v1351_v10 = vpop.f32.mrb[3].mxu0 }
 0x1a8   : > { %v1540_v3 = vadd.f32 %v3153_v39, %v1501_v46  ;;  %v1521_v23 = vadd.f32 %v3153_v39, %v1482_v40  ;;  %v1483_v57 = vmul.f32 %v3148_v17, %v1351_v10  ;;  %v1571_v56 = vmax.f32 %v1539_v6, 0.0 }
 0x1a9   : > { %v1538_v38 = vadd.f32 %v3153_v39, %v1499_v33  ;;  %v1524_v55 = vadd.f32 %v3153_v39, %v1485_v0  ;;  %v1569_v53 = vmax.f32 %v1537_v12, 0.0  ;;  %v1555_v25 = vmax.f32 %v1523_v44, 0.0 }
 0x1aa   : > { %v1572_v11 = vmax.f32 %v1540_v3, 0.0  ;;  %v1522_v43 = vadd.f32 %v3153_v39, %v1483_v57  ;;  %v1553_v13 = vmax.f32 %v1521_v23, 0.0 }
 0x1ab   : > { %v1570_v15 = vmax.f32 %v1538_v38, 0.0  ;;  %v1556_v47 = vmax.f32 %v1524_v55, 0.0 }
 0x1ac   : > { %v2031_v49 = vpack.c.bf16 %v1572_v11, %v1571_v56  ;;  %v1554_v19 = vmax.f32 %v1522_v43, 0.0 }
 0x1ad   : > { %v2026_v60 = vpack.c.bf16 %v1570_v15, %v1569_v53  ;;  %v1991_v50 = vpack.c.bf16 %v1556_v47, %v1555_v25 }
 0x1ae   : > { %2071 = vst [vmem:[%s3174_s11 + $0x48] sm:$0xff] %v2031_v49   ;;  %v1986_v27 = vpack.c.bf16 %v1554_v19, %v1553_v13 }
 0x1af   : > { %2070 = vst [vmem:[%s3174_s11 + $0x40] sm:$0xff] %v2026_v60   ;;  %2063 = vst [vmem:[%s3174_s11 + $0x8] sm:$0xff] %v1991_v50  }
 0x1b0   : > { %1987 = vst [vmem:[%s3174_s11] sm:$0xff] %v1986_v27  }
 0x1e3   : > { %v2140_v54 = vpop.f32.mrb[4].mxu1 }
 0x1e4   : > { %v1504_v62 = vmul.f32 %v2140_v54, %v3148_v17  ;;  %v1428_v2 = vpop.f32.mrb[5].mxu1  ;;  %v2124_v28 = vpop.f32.mrb[4].mxu0 }
 0x1e5   : > { %v1502_v14 = vmul.f32 %v3148_v17, %v1428_v2  ;;  %v2141_v8 = vpop.f32.mrb[6].mxu1  ;;  %v1488_v5 = vmul.f32 %v2124_v28, %v3148_v17  ;;  %v1364_v9 = vpop.f32.mrb[5].mxu0 }
 0x1e6   : > { %v1543_v30 = vadd.f32 %v3153_v39, %v1504_v62  ;;  %v1505_v45 = vmul.f32 %v2141_v8, %v3148_v17  ;;  %v1431_v7 = vpop.f32.mrb[7].mxu1  ;;  %v1486_v35 = vmul.f32 %v3148_v17, %v1364_v9  ;;  %v2125_v52 = vpop.f32.mrb[6].mxu0 }
 0x1e7   : > { %v1541_v32 = vadd.f32 %v3153_v39, %v1502_v14  ;;  %v1503_v16 = vmul.f32 %v3148_v17, %v1431_v7  ;;  %v1527_v20 = vadd.f32 %v3153_v39, %v1488_v5  ;;  %v1489_v58 = vmul.f32 %v2125_v52, %v3148_v17  ;;  %v1367_v41 = vpop.f32.mrb[7].mxu0 }
 0x1e8   : > { %v1544_v4 = vadd.f32 %v3153_v39, %v1505_v45  ;;  %v1525_v21 = vadd.f32 %v3153_v39, %v1486_v35  ;;  %v1487_v18 = vmul.f32 %v3148_v17, %v1367_v41  ;;  %v1575_v34 = vmax.f32 %v1543_v30, 0.0 }
 0x1e9   : > { %v1542_v59 = vadd.f32 %v3153_v39, %v1503_v16  ;;  %v1528_v51 = vadd.f32 %v3153_v39, %v1489_v58  ;;  %v1573_v42 = vmax.f32 %v1541_v32, 0.0  ;;  %v1559_v29 = vmax.f32 %v1527_v20, 0.0 }
 0x1ea   : > { %v1576_v26 = vmax.f32 %v1544_v4, 0.0  ;;  %v1526_v48 = vadd.f32 %v3153_v39, %v1487_v18  ;;  %v1557_v37 = vmax.f32 %v1525_v21, 0.0 }
 0x1eb   : > { %v1574_v61 = vmax.f32 %v1542_v59, 0.0  ;;  %v1560_v1 = vmax.f32 %v1528_v51, 0.0 }
 0x1ec   : > { %v2041_v36 = vpack.c.bf16 %v1576_v26, %v1575_v34  ;;  %v1558_v63 = vmax.f32 %v1526_v48, 0.0 }
 0x1ed   : > { %v2036_v6 = vpack.c.bf16 %v1574_v61, %v1573_v42  ;;  %v2001_v31 = vpack.c.bf16 %v1560_v1, %v1559_v29 }
 0x1ee   : > { %2073 = vst [vmem:[%s3174_s11 + $0x58] sm:$0xff] %v2041_v36   ;;  %v1996_v46 = vpack.c.bf16 %v1558_v63, %v1557_v37 }
 0x1ef   : > { %2072 = vst [vmem:[%s3174_s11 + $0x50] sm:$0xff] %v2036_v6   ;;  %2065 = vst [vmem:[%s3174_s11 + $0x18] sm:$0xff] %v2001_v31  }
 0x1f0   : > { %2064 = vst [vmem:[%s3174_s11 + $0x10] sm:$0xff] %v1996_v46  }
 0x223   : > { %v2144_v24 = vpop.f32.mrb[8].mxu1 }
 0x224   : > { %v1508_v40 = vmul.f32 %v2144_v24, %v3148_v17  ;;  %v1444_v12 = vpop.f32.mrb[9].mxu1  ;;  %v2128_v22 = vpop.f32.mrb[8].mxu0 }
 0x225   : > { %v1506_v33 = vmul.f32 %v3148_v17, %v1444_v12  ;;  %v2145_v44 = vpop.f32.mrb[10].mxu1  ;;  %v1492_v0 = vmul.f32 %v2128_v22, %v3148_v17  ;;  %v1380_v10 = vpop.f32.mrb[9].mxu0 }
 0x226   : > { %v1547_v3 = vadd.f32 %v3153_v39, %v1508_v40  ;;  %v1509_v23 = vmul.f32 %v2145_v44, %v3148_v17  ;;  %v1447_v57 = vpop.f32.mrb[11].mxu1  ;;  %v1490_v38 = vmul.f32 %v3148_v17, %v1380_v10  ;;  %v2129_v55 = vpop.f32.mrb[10].mxu0 }
 0x227   : > { %v1545_v56 = vadd.f32 %v3153_v39, %v1506_v33  ;;  %v1507_v11 = vmul.f32 %v3148_v17, %v1447_v57  ;;  %v1531_v53 = vadd.f32 %v3153_v39, %v1492_v0  ;;  %v1493_v43 = vmul.f32 %v2129_v55, %v3148_v17  ;;  %v1383_v25 = vpop.f32.mrb[11].mxu0 }
 0x228   : > { %v1548_v15 = vadd.f32 %v3153_v39, %v1509_v23  ;;  %v1529_v47 = vadd.f32 %v3153_v39, %v1490_v38  ;;  %v1491_v49 = vmul.f32 %v3148_v17, %v1383_v25  ;;  %v1579_v19 = vmax.f32 %v1547_v3, 0.0 }
 0x229   : > { %v1546_v13 = vadd.f32 %v3153_v39, %v1507_v11  ;;  %v1532_v60 = vadd.f32 %v3153_v39, %v1493_v43  ;;  %v1577_v27 = vmax.f32 %v1545_v56, 0.0  ;;  %v1563_v2 = vmax.f32 %v1531_v53, 0.0 }
 0x22a   : > { %v1580_v50 = vmax.f32 %v1548_v15, 0.0  ;;  %v1530_v54 = vadd.f32 %v3153_v39, %v1491_v49  ;;  %v1561_v8 = vmax.f32 %v1529_v47, 0.0 }
 0x22b   : > { %v1578_v62 = vmax.f32 %v1546_v13, 0.0  ;;  %v1564_v28 = vmax.f32 %v1532_v60, 0.0 }
 0x22c   : > { %v2051_v14 = vpack.c.bf16 %v1580_v50, %v1579_v19  ;;  %v1562_v5 = vmax.f32 %v1530_v54, 0.0 }
 0x22d   : > { %v2046_v30 = vpack.c.bf16 %v1578_v62, %v1577_v27  ;;  %v2011_v9 = vpack.c.bf16 %v1564_v28, %v1563_v2 }
 0x22e   : > { %2075 = vst [vmem:[%s3174_s11 + $0x68] sm:$0xff] %v2051_v14   ;;  %v2006_v45 = vpack.c.bf16 %v1562_v5, %v1561_v8 }
 0x22f   : > { %2074 = vst [vmem:[%s3174_s11 + $0x60] sm:$0xff] %v2046_v30   ;;  %2067 = vst [vmem:[%s3174_s11 + $0x28] sm:$0xff] %v2011_v9  }
 0x230   : > { %2066 = vst [vmem:[%s3174_s11 + $0x20] sm:$0xff] %v2006_v45  }
 0x25f   : > { %v2148_v7 = vpop.f32.mrb[12].mxu1 }
 0x260   : > { %v1512_v35 = vmul.f32 %v2148_v7, %v3148_v17  ;;  %v1460_v32 = vpop.f32.mrb[13].mxu1  ;;  %v2132_v52 = vpop.f32.mrb[12].mxu0 }
 0x261   : > { %v1510_v16 = vmul.f32 %v3148_v17, %v1460_v32  ;;  %v2149_v20 = vpop.f32.mrb[14].mxu1  ;;  %v1496_v58 = vmul.f32 %v2132_v52, %v3148_v17  ;;  %v1396_v41 = vpop.f32.mrb[13].mxu0 }
 0x262   : > { %v1551_v4 = vadd.f32 %v3153_v39, %v1512_v35  ;;  %v1513_v21 = vmul.f32 %v2149_v20, %v3148_v17  ;;  %v1463_v18 = vpop.f32.mrb[15].mxu1  ;;  %v1494_v59 = vmul.f32 %v3148_v17, %v1396_v41  ;;  %v2133_v51 = vpop.f32.mrb[14].mxu0 }
 0x263   : > { %v1549_v34 = vadd.f32 %v3153_v39, %v1510_v16  ;;  %v1511_v26 = vmul.f32 %v3148_v17, %v1463_v18  ;;  %v1535_v42 = vadd.f32 %v3153_v39, %v1496_v58  ;;  %v1497_v48 = vmul.f32 %v2133_v51, %v3148_v17  ;;  %v1399_v29 = vpop.f32.mrb[15].mxu0 }
 0x264   : > { %v1552_v61 = vadd.f32 %v3153_v39, %v1513_v21  ;;  %v1533_v1 = vadd.f32 %v3153_v39, %v1494_v59  ;;  %v1495_v36 = vmul.f32 %v3148_v17, %v1399_v29  ;;  %v1583_v63 = vmax.f32 %v1551_v4, 0.0 }
 0x265   : > { %v1550_v37 = vadd.f32 %v3153_v39, %v1511_v26  ;;  %v1536_v6 = vadd.f32 %v3153_v39, %v1497_v48  ;;  %v1581_v46 = vmax.f32 %v1549_v34, 0.0  ;;  %v1567_v12 = vmax.f32 %v1535_v42, 0.0 }
 0x266   : > { %v1584_v31 = vmax.f32 %v1552_v61, 0.0  ;;  %v1534_v24 = vadd.f32 %v3153_v39, %v1495_v36  ;;  %v1565_v17 = vmax.f32 %v1533_v1, 0.0 }
 0x267   : > { %v1582_v40 = vmax.f32 %v1550_v37, 0.0  ;;  %v1568_v22 = vmax.f32 %v1536_v6, 0.0 }
 0x268   : > { %v2061_v33 = vpack.c.bf16 %v1584_v31, %v1583_v63  ;;  %v1566_v44 = vmax.f32 %v1534_v24, 0.0 }
 0x269   : > { %v2056_v0 = vpack.c.bf16 %v1582_v40, %v1581_v46  ;;  %v2021_v3 = vpack.c.bf16 %v1568_v22, %v1567_v12 }
 0x26a   : > { %2077 = vst [vmem:[%s3174_s11 + $0x78] sm:$0xff] %v2061_v33   ;;  %v2016_v39 = vpack.c.bf16 %v1566_v44, %v1565_v17 }
 0x26b   : > { %2076 = vst [vmem:[%s3174_s11 + $0x70] sm:$0xff] %v2056_v0   ;;  %2069 = vst [vmem:[%s3174_s11 + $0x38] sm:$0xff] %v2021_v3  }
 0x26c   : > { %2068 = vst [vmem:[%s3174_s11 + $0x30] sm:$0xff] %v2016_v39  }
 0x26d   : > { %2290 = shalt.err (!%p2287_p5)
}
 0x26e   : > { %s2291_s8 = scalar_lea.hbm %s3242_s26, 2048  ;;  %s2295_s22 = scalar_lea.hbm %s3302_s4, 4096 }
 0x26f   : > { %p2292_p6 = scmp.ne.s32.totalorder %s3242_s26, %s2291_s8  ;;  %p2296_p10 = scmp.lt.u32.totalorder %s3242_s26, %s3302_s4 }
 0x270   : > { %p2297_p11 = scmp.lt.u32.totalorder %s2295_s22, %s2291_s8  ;;  %p2299_p13 = scmp.lt.u32.totalorder %s2291_s8, %s3242_s26 }
 0x271   : > { %p2293_p7 = pnand %p2292_p6, %p2432_p4 }
 0x272   : > { %p2298_p12 = por %p2297_p11, %p2296_p10 }
 0x273   : > { %p2294_p9 = pneg %p2293_p7 }
 0x274   : > { %p2300_p0 = por %p2299_p13, %p2298_p12 }
 0x276   : > { %p2301_p1 = pnand %p2300_p0, %p2294_p9 }
 0x278   : > { %2304 = shalt.err (!%p2301_p1)
}
 0x279   : > { %s2366_s12 = smov 64  }
 0x27a   : > { %2167 = dma.vmem_to_hbm [thread:$0]  (%p2432_p4), %s3245_s14, 2048, %s3242_s26, %s3251_s18, %s2366_s12, %s2366_s12, %s2359_s10  }
 0x27b PF: > { %p2173_p2 = scmp.ge.s32.totalorder %s2355_s20, 2  ;;  %s1777_s21 = sand.u32 1, %s2335_s15  }
 0x27c   : > { %s1778_s24 = scalar_lea.sflag [#allocation3], %s1777_s21 }
 0x27d   : > { %p2170_p3 = pnand %p2173_p2, %p2439_p8 }
 0x27f   : > { %2330 = dma.done.wait (!%p2170_p3), %s1778_s24, 2048  }
 0x280   : > { %2332 = vsyncadd (!%p2170_p3), %s1778_s24, 4294965248  ;;  %s17_s20 = sadd.s32 1, %s2355_s20   ;;  %s3305_s15 = smov %s2339_s16 }
 0x281   : > { %p14_p5 = scmp.ge.s32.totalorder %s17_s20, 4   ;;  %s3306_s16 = smov %s2343_s17 }
 0x282   : > { %s3307_s17 = smov %s2445_s28  ;;  %s3308_s18 = smov %s2351_s19 }
 0x283   : > { %s3309_s19 = smov %s3311_s23  ;;  %16 = sbr.rel (!%p14_p5) target bundleno = 4 (0x4), region = 71 }
 0x28a   :  { %1783 = vsyncpa [#allocation3], 1 }
 0x28b   :  { %1785 = vsyncpa [#allocation3 + $0x1], 1 }

</bundles_post_ra>
